<compile_context>
chip_gen: v7x
topology: tpu7x:2x2x1
jax: 0.10.0
libtpu: 0.0.40
codegen_flags: <defaults>
</compile_context>

<pallas_src>
import math
import jax
import jax.numpy as jnp
from jax import lax
from jax.experimental import pallas as pl
from jax.experimental.pallas import tpu as pltpu

# ---- model hyper-parameters (small, consistent with SASRec config) ----
B  = 2     # batch
S  = 8     # max_seq_length
H  = 32    # hidden_size
NH = 2     # n_heads
DH = H // NH
I  = 64    # inner_size
L  = 2     # n_layers
EPS = 1e-12
INIT_RANGE = 0.02


def _layer_norm(x, g, b, eps=EPS):
    mu = jnp.mean(x, axis=-1, keepdims=True)
    var = jnp.mean((x - mu) ** 2, axis=-1, keepdims=True)
    return (x - mu) * lax.rsqrt(var + eps) * g + b


def _gelu(x):
    # exact gelu (erf form), same as RecBole's gelu
    return x * 0.5 * (1.0 + lax.erf(x / math.sqrt(2.0)))


def sasrec_kernel(lens_ref,                               # scalar prefetch (SMEM) [B]
                  seq_ref, emb_ref, posln_ref,            # per-batch + packed inputs
                  wqkv_ref, bqkv_ref, wo_ref,
                  w1_ref, b1_ref, w2_ref, vecs_ref,
                  out_ref,
                  xs_ref):                                # VMEM scratch (S, H)
    b = pl.program_id(0)

    # --- input embedding + position embedding, then LayerNorm (dropout == id in eval)
    pos  = posln_ref[0:S, :]            # (S, H)
    ln_g = posln_ref[S:S + 1, :]        # (1, H)
    ln_b = posln_ref[S + 1:S + 2, :]    # (1, H)
    x = emb_ref[0] + pos                # (S, H)
    x = _layer_norm(x, ln_g, ln_b)

    # --- attention bias: causal AND key-not-padding  (torch.tril of padding mask)
    seq = seq_ref[0]                                     # (1, S) int32
    key_pad = seq != 0                                   # (1, S)
    row = lax.broadcasted_iota(jnp.int32, (S, S), 0)
    col = lax.broadcasted_iota(jnp.int32, (S, S), 1)
    keep = jnp.logical_and(col <= row, key_pad)          # (S, S)
    bias = jnp.where(keep, 0.0, -10000.0).astype(jnp.float32)

    scale = 1.0 / math.sqrt(DH)
    dn = (((1,), (1,)), ((), ()))       # contract last dims of both operands

    for l in range(L):
        wo_l  = wo_ref[l]               # (H, H)
        vec_l = vecs_ref[l]             # (6, H): bo, l1g, l1b, b2, l2g, l2b

        # ---------------- multi-head self-attention ----------------
        # fused QKV projection: one (S,H) x (H,3H) matmul
        qkv = jnp.dot(x, wqkv_ref[l], preferred_element_type=jnp.float32) + bqkv_ref[l]
        acc = jnp.zeros((S, H), jnp.float32)
        for h in range(NH):
            q_h = qkv[:, h * DH:(h + 1) * DH]
            k_h = qkv[:, H + h * DH:H + (h + 1) * DH]
            v_h = qkv[:, 2 * H + h * DH:2 * H + (h + 1) * DH]
            s = lax.dot_general(q_h, k_h, dn,
                                preferred_element_type=jnp.float32) * scale + bias
            s = s - jnp.max(s, axis=-1, keepdims=True)
            p = jnp.exp(s)
            p = p * pl.reciprocal(jnp.sum(p, axis=-1, keepdims=True), approx=True)
            ctx_h = jnp.dot(p, v_h, preferred_element_type=jnp.float32)   # (S, DH)
            # accumulate per-head output projection (avoids lane concat)
            acc = acc + jnp.dot(ctx_h, wo_l[h * DH:(h + 1) * DH, :],
                                preferred_element_type=jnp.float32)
        attn_out = acc + vec_l[0:1, :]                                    # + bo
        x = _layer_norm(attn_out + x, vec_l[1:2, :], vec_l[2:3, :])

        # ---------------- point-wise feed-forward ----------------
        hdn = jnp.dot(x, w1_ref[l], preferred_element_type=jnp.float32) + b1_ref[l]
        hdn = _gelu(hdn)
        ffn = jnp.dot(hdn, w2_ref[l], preferred_element_type=jnp.float32) + vec_l[3:4, :]
        x = _layer_norm(ffn + x, vec_l[4:5, :], vec_l[5:6, :])

    # --- gather_indexes: hidden state at position (item_seq_len - 1)
    # dynamic sublane read from scratch (replaces one-hot multiply+reduce).
    # TODO(synk): item_seq_len == 0 gives idx == -1; behaviour is undefined here,
    # matching the torch module's own undefined behaviour for empty sequences.
    xs_ref[...] = x
    idx = lens_ref[b] - 1
    out_ref[0] = xs_ref[pl.ds(idx, 1), :]                # (1, H)


def sasrec_forward_pallas(item_seq, item_seq_len, item_emb, params):
    seq3 = item_seq.reshape(B, 1, S).astype(jnp.int32)
    lens = item_seq_len.astype(jnp.int32)

    # ---- pack weights into a few blobs (fewer BlockSpecs / DMA descriptors) ----
    posln = jnp.concatenate([params["pos"], params["ln_g"], params["ln_b"]],
                            axis=0)                                     # (S+2, H)
    wqkv = jnp.concatenate([params["wq"], params["wk"], params["wv"]],
                           axis=-1)                                     # (L, H, 3H)
    bqkv = jnp.concatenate([params["bq"], params["bk"], params["bv"]],
                           axis=-1)                                     # (L, 1, 3H)
    vecs = jnp.concatenate([params["bo"], params["l1g"], params["l1b"],
                            params["b2"], params["l2g"], params["l2b"]],
                           axis=1)                                      # (L, 6, H)

    weights = [posln, wqkv, bqkv, params["wo"], params["w1"], params["b1"],
               params["w2"], vecs]

    def full_spec(arr):
        nd = arr.ndim
        return pl.BlockSpec(arr.shape, lambda b, lens, nd=nd: (0,) * nd)

    in_specs = (
        [pl.BlockSpec((1, 1, S), lambda b, lens: (b, 0, 0)),   # item_seq
         pl.BlockSpec((1, S, H), lambda b, lens: (b, 0, 0))]   # item_emb
        + [full_spec(a) for a in weights]
    )

    grid_spec = pltpu.PrefetchScalarGridSpec(
        num_scalar_prefetch=1,
        grid=(B,),
        in_specs=in_specs,
        out_specs=pl.BlockSpec((1, 1, H), lambda b, lens: (b, 0, 0)),
        scratch_shapes=[pltpu.VMEM((S, H), jnp.float32)],
    )

    out = pl.pallas_call(
        sasrec_kernel,
        out_shape=jax.ShapeDtypeStruct((B, 1, H), jnp.float32),
        grid_spec=grid_spec,
        # batch rows are independent -> "parallel" lets v7x's 2 TCs split them.
        compiler_params=pltpu.CompilerParams(dimension_semantics=("parallel",)),
    )(lens, seq3, item_emb, *weights)
    return out[:, 0, :]                                   # [B, H]


# ---------------- pure-JAX reference (same math) ----------------
def sasrec_forward_ref(item_seq, item_seq_len, item_emb, params):
    x = item_emb + params["pos"][None]                    # (B, S, H)
    x = _layer_norm(x, params["ln_g"], params["ln_b"])

    key_pad = (item_seq != 0)[:, None, :]                 # (B, 1, S)
    row = jnp.arange(S)[:, None]
    col = jnp.arange(S)[None, :]
    keep = jnp.logical_and(col <= row, key_pad)           # (B, S, S)
    bias = jnp.where(keep, 0.0, -10000.0).astype(jnp.float32)

    scale = 1.0 / math.sqrt(DH)
    for l in range(L):
        q = x @ params["wq"][l] + params["bq"][l]
        k = x @ params["wk"][l] + params["bk"][l]
        v = x @ params["wv"][l] + params["bv"][l]
        q = q.reshape(B, S, NH, DH).transpose(0, 2, 1, 3)
        k = k.reshape(B, S, NH, DH).transpose(0, 2, 1, 3)
        v = v.reshape(B, S, NH, DH).transpose(0, 2, 1, 3)
        s = jnp.einsum("bhqd,bhkd->bhqk", q, k) * scale + bias[:, None]
        p = jax.nn.softmax(s, axis=-1)
        ctx = jnp.einsum("bhqk,bhkd->bhqd", p, v).transpose(0, 2, 1, 3).reshape(B, S, H)
        attn_out = ctx @ params["wo"][l] + params["bo"][l]
        x = _layer_norm(attn_out + x, params["l1g"][l], params["l1b"][l])

        hdn = _gelu(x @ params["w1"][l] + params["b1"][l])
        ffn = hdn @ params["w2"][l] + params["b2"][l]
        x = _layer_norm(ffn + x, params["l2g"][l], params["l2b"][l])

    idx = item_seq_len - 1
    return x[jnp.arange(B), idx]                          # (B, H)


def init_params(key):
    ks = jax.random.split(key, 8)
    std = INIT_RANGE
    return {
        "pos":  jax.random.normal(ks[0], (S, H), jnp.float32) * std,
        "ln_g": jnp.ones((1, H), jnp.float32),
        "ln_b": jnp.zeros((1, H), jnp.float32),
        "wq":   jax.random.normal(ks[1], (L, H, H), jnp.float32) * std,
        "bq":   jnp.zeros((L, 1, H), jnp.float32),
        "wk":   jax.random.normal(ks[2], (L, H, H), jnp.float32) * std,
        "bk":   jnp.zeros((L, 1, H), jnp.float32),
        "wv":   jax.random.normal(ks[3], (L, H, H), jnp.float32) * std,
        "bv":   jnp.zeros((L, 1, H), jnp.float32),
        "wo":   jax.random.normal(ks[4], (L, H, H), jnp.float32) * std,
        "bo":   jnp.zeros((L, 1, H), jnp.float32),
        "l1g":  jnp.ones((L, 1, H), jnp.float32),
        "l1b":  jnp.zeros((L, 1, H), jnp.float32),
        "w1":   jax.random.normal(ks[5], (L, H, I), jnp.float32) * std,
        "b1":   jnp.zeros((L, 1, I), jnp.float32),
        "w2":   jax.random.normal(ks[6], (L, I, H), jnp.float32) * std,
        "b2":   jnp.zeros((L, 1, H), jnp.float32),
        "l2g":  jnp.ones((L, 1, H), jnp.float32),
        "l2b":  jnp.zeros((L, 1, H), jnp.float32),
    }


if __name__ == "__main__":
    key = jax.random.PRNGKey(0)
    kp, ke = jax.random.split(key)
    params = init_params(kp)

    # deterministic inputs: one full-length sequence, one padded sequence
    item_seq = jnp.array([[1, 2, 3, 4, 5, 6, 7, 8],
                          [9, 3, 7, 2, 4, 0, 0, 0]], dtype=jnp.int32)
    item_seq_len = jnp.array([8, 5], dtype=jnp.int32)
    item_emb = jax.random.normal(ke, (B, S, H), jnp.float32)

    out = sasrec_forward_pallas(item_seq, item_seq_len, item_emb, params)
    out = jax.block_until_ready(out)

    ref = sasrec_forward_ref(item_seq, item_seq_len, item_emb, params)
    assert out.shape == (B, H)
    max_diff = float(jnp.max(jnp.abs(out - ref)))
    assert max_diff < 5e-2, f"mismatch vs reference: {max_diff}"
    print("KERNEL_OK")
</pallas_src>

<mosaic_0001>
module attributes {stable_mosaic.version = 11 : i64} {
  func.func @sasrec_kernel(%arg0: i32, %arg1: memref<2xi32, #tpu.memory_space<smem>>, %arg2: memref<1x1x8xi32, #tpu.memory_space<vmem>>, %arg3: memref<1x8x32xf32, #tpu.memory_space<vmem>>, %arg4: memref<10x32xf32, #tpu.memory_space<vmem>>, %arg5: memref<2x32x96xf32, #tpu.memory_space<vmem>>, %arg6: memref<2x1x96xf32, #tpu.memory_space<vmem>>, %arg7: memref<2x32x32xf32, #tpu.memory_space<vmem>>, %arg8: memref<2x32x64xf32, #tpu.memory_space<vmem>>, %arg9: memref<2x1x64xf32, #tpu.memory_space<vmem>>, %arg10: memref<2x64x32xf32, #tpu.memory_space<vmem>>, %arg11: memref<2x6x32xf32, #tpu.memory_space<vmem>>, %arg12: memref<1x1x32xf32, #tpu.memory_space<vmem>>, %arg13: memref<8x32xf32, #tpu.memory_space<vmem>>) attributes {dimension_semantics = [#tpu.dimension_semantics<parallel>], iteration_bounds = array<i64: 2>, scalar_prefetch = 1 : i64, scratch_operands = 1 : i64, tpu.core_type = #tpu.core_type<tc>, window_params = [{transform_indices = @transform_0, window_bounds = array<i64: 1, 1, 8>}, {transform_indices = @transform_1, window_bounds = array<i64: 1, 8, 32>}, {pipeline_mode = #tpu.pipeline_mode<synchronous>, transform_indices = @transform_2, window_bounds = array<i64: 10, 32>}, {pipeline_mode = #tpu.pipeline_mode<synchronous>, transform_indices = @transform_3, window_bounds = array<i64: 2, 32, 96>}, {pipeline_mode = #tpu.pipeline_mode<synchronous>, transform_indices = @transform_4, window_bounds = array<i64: 2, 1, 96>}, {pipeline_mode = #tpu.pipeline_mode<synchronous>, transform_indices = @transform_5, window_bounds = array<i64: 2, 32, 32>}, {pipeline_mode = #tpu.pipeline_mode<synchronous>, transform_indices = @transform_6, window_bounds = array<i64: 2, 32, 64>}, {pipeline_mode = #tpu.pipeline_mode<synchronous>, transform_indices = @transform_7, window_bounds = array<i64: 2, 1, 64>}, {pipeline_mode = #tpu.pipeline_mode<synchronous>, transform_indices = @transform_8, window_bounds = array<i64: 2, 64, 32>}, {pipeline_mode = #tpu.pipeline_mode<synchronous>, transform_indices = @transform_9, window_bounds = array<i64: 2, 6, 32>}, {transform_indices = @transform_10, window_bounds = array<i64: 1, 1, 32>}]} {
    %c0 = arith.constant 0 : index
    %c0_0 = arith.constant 0 : index
    %0 = vector.load %arg4[%c0, %c0_0] : memref<10x32xf32, #tpu.memory_space<vmem>>, vector<8x32xf32>
    %c8 = arith.constant 8 : index
    %c0_1 = arith.constant 0 : index
    %1 = vector.load %arg4[%c8, %c0_1] : memref<10x32xf32, #tpu.memory_space<vmem>>, vector<1x32xf32>
    %c9 = arith.constant 9 : index
    %c0_2 = arith.constant 0 : index
    %2 = vector.load %arg4[%c9, %c0_2] : memref<10x32xf32, #tpu.memory_space<vmem>>, vector<1x32xf32>
    %c0_3 = arith.constant 0 : index
    %c0_4 = arith.constant 0 : index
    %c0_5 = arith.constant 0 : index
    %3 = vector.load %arg3[%c0_3, %c0_4, %c0_5] : memref<1x8x32xf32, #tpu.memory_space<vmem>>, vector<1x8x32xf32>
    %4 = vector.shape_cast %3 : vector<1x8x32xf32> to vector<8x32xf32>
    %5 = arith.addf %4, %0 : vector<8x32xf32>
    %cst = arith.constant dense<0.000000e+00> : vector<8xf32>
    %6 = vector.multi_reduction <add>, %5, %cst [1] : vector<8x32xf32> to vector<8xf32>
    %7 = vector.shape_cast %6 : vector<8xf32> to vector<8x1xf32>
    %cst_6 = arith.constant 3.200000e+01 : f32
    %8 = vector.broadcast %cst_6 : f32 to vector<8x1xf32>
    %9 = arith.divf %7, %8 : vector<8x1xf32>
    %10 = vector.broadcast %9 : vector<8x1xf32> to vector<8x32xf32>
    %11 = arith.subf %5, %10 : vector<8x32xf32>
    %12 = arith.mulf %11, %11 : vector<8x32xf32>
    %cst_7 = arith.constant dense<0.000000e+00> : vector<8xf32>
    %13 = vector.multi_reduction <add>, %12, %cst_7 [1] : vector<8x32xf32> to vector<8xf32>
    %14 = vector.shape_cast %13 : vector<8xf32> to vector<8x1xf32>
    %cst_8 = arith.constant 3.200000e+01 : f32
    %15 = vector.broadcast %cst_8 : f32 to vector<8x1xf32>
    %16 = arith.divf %14, %15 : vector<8x1xf32>
    %17 = vector.broadcast %9 : vector<8x1xf32> to vector<8x32xf32>
    %18 = arith.subf %5, %17 : vector<8x32xf32>
    %cst_9 = arith.constant 9.99999996E-13 : f32
    %19 = vector.broadcast %cst_9 : f32 to vector<8x1xf32>
    %20 = arith.addf %16, %19 : vector<8x1xf32>
    %21 = math.rsqrt %20 : vector<8x1xf32>
    %22 = vector.broadcast %21 : vector<8x1xf32> to vector<8x32xf32>
    %23 = arith.mulf %18, %22 : vector<8x32xf32>
    %24 = vector.broadcast %1 : vector<1x32xf32> to vector<8x32xf32>
    %25 = arith.mulf %23, %24 : vector<8x32xf32>
    %26 = vector.broadcast %2 : vector<1x32xf32> to vector<8x32xf32>
    %27 = arith.addf %25, %26 : vector<8x32xf32>
    %c0_10 = arith.constant 0 : index
    %c0_11 = arith.constant 0 : index
    %c0_12 = arith.constant 0 : index
    %28 = vector.load %arg2[%c0_10, %c0_11, %c0_12] : memref<1x1x8xi32, #tpu.memory_space<vmem>>, vector<1x1x8xi32>
    %29 = vector.shape_cast %28 : vector<1x1x8xi32> to vector<1x8xi32>
    %c0_i32 = arith.constant 0 : i32
    %30 = vector.broadcast %c0_i32 : i32 to vector<1x8xi32>
    %31 = arith.cmpi ne, %29, %30 : vector<1x8xi32>
    %32 = tpu.iota {dimensions = array<i32: 0>} : vector<8x8xi32>
    %33 = tpu.iota {dimensions = array<i32: 1>} : vector<8x8xi32>
    %34 = arith.cmpi sle, %33, %32 : vector<8x8xi32>
    %35 = vector.broadcast %31 : vector<1x8xi1> to vector<8x8xi1>
    %36 = arith.andi %34, %35 : vector<8x8xi1>
    %cst_13 = arith.constant 0.000000e+00 : f32
    %cst_14 = arith.constant -1.000000e+04 : f32
    %37 = vector.broadcast %cst_13 : f32 to vector<8x8xf32>
    %38 = vector.broadcast %cst_14 : f32 to vector<8x8xf32>
    %39 = arith.select %36, %37, %38 : vector<8x8xi1>, vector<8x8xf32>
    %c0_15 = arith.constant 0 : index
    %c0_16 = arith.constant 0 : index
    %c0_17 = arith.constant 0 : index
    %40 = vector.load %arg7[%c0_15, %c0_16, %c0_17] : memref<2x32x32xf32, #tpu.memory_space<vmem>>, vector<1x32x32xf32>
    %41 = vector.shape_cast %40 : vector<1x32x32xf32> to vector<32x32xf32>
    %c0_18 = arith.constant 0 : index
    %c0_19 = arith.constant 0 : index
    %c0_20 = arith.constant 0 : index
    %42 = vector.load %arg11[%c0_18, %c0_19, %c0_20] : memref<2x6x32xf32, #tpu.memory_space<vmem>>, vector<1x6x32xf32>
    %43 = vector.shape_cast %42 : vector<1x6x32xf32> to vector<6x32xf32>
    %c0_21 = arith.constant 0 : index
    %c0_22 = arith.constant 0 : index
    %c0_23 = arith.constant 0 : index
    %44 = vector.load %arg5[%c0_21, %c0_22, %c0_23] : memref<2x32x96xf32, #tpu.memory_space<vmem>>, vector<1x32x96xf32>
    %45 = vector.shape_cast %44 : vector<1x32x96xf32> to vector<32x96xf32>
    %cst_24 = arith.constant dense<0.000000e+00> : vector<8x96xf32>
    %46 = tpu.matmul %27, %45, %cst_24 {dimension_numbers = #tpu.dot_dimension_numbers<[1], [0], [0], [1], [0, 0, 1, 1], [], []>} : vector<8x32xf32>, vector<32x96xf32>, vector<8x96xf32> -> vector<8x96xf32>
    %c0_25 = arith.constant 0 : index
    %c0_26 = arith.constant 0 : index
    %c0_27 = arith.constant 0 : index
    %47 = vector.load %arg6[%c0_25, %c0_26, %c0_27] : memref<2x1x96xf32, #tpu.memory_space<vmem>>, vector<1x1x96xf32>
    %48 = vector.shape_cast %47 : vector<1x1x96xf32> to vector<1x96xf32>
    %49 = vector.broadcast %48 : vector<1x96xf32> to vector<8x96xf32>
    %50 = arith.addf %46, %49 : vector<8x96xf32>
    %cst_28 = arith.constant 0.000000e+00 : f32
    %51 = vector.broadcast %cst_28 : f32 to vector<8x32xf32>
    %52 = vector.extract_strided_slice %50 {offsets = [0, 0], sizes = [8, 16], strides = [1, 1]} : vector<8x96xf32> to vector<8x16xf32>
    %53 = vector.extract_strided_slice %50 {offsets = [0, 32], sizes = [8, 16], strides = [1, 1]} : vector<8x96xf32> to vector<8x16xf32>
    %54 = vector.extract_strided_slice %50 {offsets = [0, 64], sizes = [8, 16], strides = [1, 1]} : vector<8x96xf32> to vector<8x16xf32>
    %cst_29 = arith.constant dense<0.000000e+00> : vector<8x8xf32>
    %55 = tpu.matmul %52, %53, %cst_29 {dimension_numbers = #tpu.dot_dimension_numbers<[1], [1], [0], [0], [0, 0, 1, 0], [], []>} : vector<8x16xf32>, vector<8x16xf32>, vector<8x8xf32> -> vector<8x8xf32>
    %cst_30 = arith.constant 2.500000e-01 : f32
    %56 = vector.broadcast %cst_30 : f32 to vector<8x8xf32>
    %57 = arith.mulf %55, %56 : vector<8x8xf32>
    %58 = arith.addf %57, %39 : vector<8x8xf32>
    %cst_31 = arith.constant dense<0xFF800000> : vector<8xf32>
    %59 = vector.multi_reduction <maximumf>, %58, %cst_31 [1] : vector<8x8xf32> to vector<8xf32>
    %60 = vector.shape_cast %59 : vector<8xf32> to vector<8x1xf32>
    %61 = vector.broadcast %60 : vector<8x1xf32> to vector<8x8xf32>
    %62 = arith.subf %58, %61 : vector<8x8xf32>
    %63 = math.exp %62 : vector<8x8xf32>
    %cst_32 = arith.constant dense<0.000000e+00> : vector<8xf32>
    %64 = vector.multi_reduction <add>, %63, %cst_32 [1] : vector<8x8xf32> to vector<8xf32>
    %65 = vector.shape_cast %64 : vector<8xf32> to vector<8x1xf32>
    %66 = tpu.reciprocal %65 {approx = true} : vector<8x1xf32> -> vector<8x1xf32>
    %67 = vector.broadcast %66 : vector<8x1xf32> to vector<8x8xf32>
    %68 = arith.mulf %63, %67 : vector<8x8xf32>
    %cst_33 = arith.constant dense<0.000000e+00> : vector<8x16xf32>
    %69 = tpu.matmul %68, %54, %cst_33 {dimension_numbers = #tpu.dot_dimension_numbers<[1], [0], [0], [1], [0, 0, 1, 1], [], []>} : vector<8x8xf32>, vector<8x16xf32>, vector<8x16xf32> -> vector<8x16xf32>
    %70 = vector.extract_strided_slice %41 {offsets = [0, 0], sizes = [16, 32], strides = [1, 1]} : vector<32x32xf32> to vector<16x32xf32>
    %cst_34 = arith.constant dense<0.000000e+00> : vector<8x32xf32>
    %71 = tpu.matmul %69, %70, %cst_34 {dimension_numbers = #tpu.dot_dimension_numbers<[1], [0], [0], [1], [0, 0, 1, 1], [], []>} : vector<8x16xf32>, vector<16x32xf32>, vector<8x32xf32> -> vector<8x32xf32>
    %72 = arith.addf %51, %71 : vector<8x32xf32>
    %73 = vector.extract_strided_slice %50 {offsets = [0, 16], sizes = [8, 16], strides = [1, 1]} : vector<8x96xf32> to vector<8x16xf32>
    %74 = vector.extract_strided_slice %50 {offsets = [0, 48], sizes = [8, 16], strides = [1, 1]} : vector<8x96xf32> to vector<8x16xf32>
    %75 = vector.extract_strided_slice %50 {offsets = [0, 80], sizes = [8, 16], strides = [1, 1]} : vector<8x96xf32> to vector<8x16xf32>
    %cst_35 = arith.constant dense<0.000000e+00> : vector<8x8xf32>
    %76 = tpu.matmul %73, %74, %cst_35 {dimension_numbers = #tpu.dot_dimension_numbers<[1], [1], [0], [0], [0, 0, 1, 0], [], []>} : vector<8x16xf32>, vector<8x16xf32>, vector<8x8xf32> -> vector<8x8xf32>
    %cst_36 = arith.constant 2.500000e-01 : f32
    %77 = vector.broadcast %cst_36 : f32 to vector<8x8xf32>
    %78 = arith.mulf %76, %77 : vector<8x8xf32>
    %79 = arith.addf %78, %39 : vector<8x8xf32>
    %cst_37 = arith.constant dense<0xFF800000> : vector<8xf32>
    %80 = vector.multi_reduction <maximumf>, %79, %cst_37 [1] : vector<8x8xf32> to vector<8xf32>
    %81 = vector.shape_cast %80 : vector<8xf32> to vector<8x1xf32>
    %82 = vector.broadcast %81 : vector<8x1xf32> to vector<8x8xf32>
    %83 = arith.subf %79, %82 : vector<8x8xf32>
    %84 = math.exp %83 : vector<8x8xf32>
    %cst_38 = arith.constant dense<0.000000e+00> : vector<8xf32>
    %85 = vector.multi_reduction <add>, %84, %cst_38 [1] : vector<8x8xf32> to vector<8xf32>
    %86 = vector.shape_cast %85 : vector<8xf32> to vector<8x1xf32>
    %87 = tpu.reciprocal %86 {approx = true} : vector<8x1xf32> -> vector<8x1xf32>
    %88 = vector.broadcast %87 : vector<8x1xf32> to vector<8x8xf32>
    %89 = arith.mulf %84, %88 : vector<8x8xf32>
    %cst_39 = arith.constant dense<0.000000e+00> : vector<8x16xf32>
    %90 = tpu.matmul %89, %75, %cst_39 {dimension_numbers = #tpu.dot_dimension_numbers<[1], [0], [0], [1], [0, 0, 1, 1], [], []>} : vector<8x8xf32>, vector<8x16xf32>, vector<8x16xf32> -> vector<8x16xf32>
    %91 = vector.extract_strided_slice %41 {offsets = [16, 0], sizes = [16, 32], strides = [1, 1]} : vector<32x32xf32> to vector<16x32xf32>
    %cst_40 = arith.constant dense<0.000000e+00> : vector<8x32xf32>
    %92 = tpu.matmul %90, %91, %cst_40 {dimension_numbers = #tpu.dot_dimension_numbers<[1], [0], [0], [1], [0, 0, 1, 1], [], []>} : vector<8x16xf32>, vector<16x32xf32>, vector<8x32xf32> -> vector<8x32xf32>
    %93 = arith.addf %72, %92 : vector<8x32xf32>
    %94 = vector.extract_strided_slice %43 {offsets = [0, 0], sizes = [1, 32], strides = [1, 1]} : vector<6x32xf32> to vector<1x32xf32>
    %95 = vector.broadcast %94 : vector<1x32xf32> to vector<8x32xf32>
    %96 = arith.addf %93, %95 : vector<8x32xf32>
    %97 = arith.addf %96, %27 : vector<8x32xf32>
    %98 = vector.extract_strided_slice %43 {offsets = [1, 0], sizes = [1, 32], strides = [1, 1]} : vector<6x32xf32> to vector<1x32xf32>
    %99 = vector.extract_strided_slice %43 {offsets = [2, 0], sizes = [1, 32], strides = [1, 1]} : vector<6x32xf32> to vector<1x32xf32>
    %cst_41 = arith.constant dense<0.000000e+00> : vector<8xf32>
    %100 = vector.multi_reduction <add>, %97, %cst_41 [1] : vector<8x32xf32> to vector<8xf32>
    %101 = vector.shape_cast %100 : vector<8xf32> to vector<8x1xf32>
    %cst_42 = arith.constant 3.200000e+01 : f32
    %102 = vector.broadcast %cst_42 : f32 to vector<8x1xf32>
    %103 = arith.divf %101, %102 : vector<8x1xf32>
    %104 = vector.broadcast %103 : vector<8x1xf32> to vector<8x32xf32>
    %105 = arith.subf %97, %104 : vector<8x32xf32>
    %106 = arith.mulf %105, %105 : vector<8x32xf32>
    %cst_43 = arith.constant dense<0.000000e+00> : vector<8xf32>
    %107 = vector.multi_reduction <add>, %106, %cst_43 [1] : vector<8x32xf32> to vector<8xf32>
    %108 = vector.shape_cast %107 : vector<8xf32> to vector<8x1xf32>
    %cst_44 = arith.constant 3.200000e+01 : f32
    %109 = vector.broadcast %cst_44 : f32 to vector<8x1xf32>
    %110 = arith.divf %108, %109 : vector<8x1xf32>
    %111 = vector.broadcast %103 : vector<8x1xf32> to vector<8x32xf32>
    %112 = arith.subf %97, %111 : vector<8x32xf32>
    %cst_45 = arith.constant 9.99999996E-13 : f32
    %113 = vector.broadcast %cst_45 : f32 to vector<8x1xf32>
    %114 = arith.addf %110, %113 : vector<8x1xf32>
    %115 = math.rsqrt %114 : vector<8x1xf32>
    %116 = vector.broadcast %115 : vector<8x1xf32> to vector<8x32xf32>
    %117 = arith.mulf %112, %116 : vector<8x32xf32>
    %118 = vector.broadcast %98 : vector<1x32xf32> to vector<8x32xf32>
    %119 = arith.mulf %117, %118 : vector<8x32xf32>
    %120 = vector.broadcast %99 : vector<1x32xf32> to vector<8x32xf32>
    %121 = arith.addf %119, %120 : vector<8x32xf32>
    %c0_46 = arith.constant 0 : index
    %c0_47 = arith.constant 0 : index
    %c0_48 = arith.constant 0 : index
    %122 = vector.load %arg8[%c0_46, %c0_47, %c0_48] : memref<2x32x64xf32, #tpu.memory_space<vmem>>, vector<1x32x64xf32>
    %123 = vector.shape_cast %122 : vector<1x32x64xf32> to vector<32x64xf32>
    %cst_49 = arith.constant dense<0.000000e+00> : vector<8x64xf32>
    %124 = tpu.matmul %121, %123, %cst_49 {dimension_numbers = #tpu.dot_dimension_numbers<[1], [0], [0], [1], [0, 0, 1, 1], [], []>} : vector<8x32xf32>, vector<32x64xf32>, vector<8x64xf32> -> vector<8x64xf32>
    %c0_50 = arith.constant 0 : index
    %c0_51 = arith.constant 0 : index
    %c0_52 = arith.constant 0 : index
    %125 = vector.load %arg9[%c0_50, %c0_51, %c0_52] : memref<2x1x64xf32, #tpu.memory_space<vmem>>, vector<1x1x64xf32>
    %126 = vector.shape_cast %125 : vector<1x1x64xf32> to vector<1x64xf32>
    %127 = vector.broadcast %126 : vector<1x64xf32> to vector<8x64xf32>
    %128 = arith.addf %124, %127 : vector<8x64xf32>
    %cst_53 = arith.constant 5.000000e-01 : f32
    %129 = vector.broadcast %cst_53 : f32 to vector<8x64xf32>
    %130 = arith.mulf %128, %129 : vector<8x64xf32>
    %cst_54 = arith.constant 1.41421354 : f32
    %131 = vector.broadcast %cst_54 : f32 to vector<8x64xf32>
    %132 = arith.divf %128, %131 : vector<8x64xf32>
    %133 = math.erf %132 : vector<8x64xf32>
    %cst_55 = arith.constant 1.000000e+00 : f32
    %134 = vector.broadcast %cst_55 : f32 to vector<8x64xf32>
    %135 = arith.addf %134, %133 : vector<8x64xf32>
    %136 = arith.mulf %130, %135 : vector<8x64xf32>
    %c0_56 = arith.constant 0 : index
    %c0_57 = arith.constant 0 : index
    %c0_58 = arith.constant 0 : index
    %137 = vector.load %arg10[%c0_56, %c0_57, %c0_58] : memref<2x64x32xf32, #tpu.memory_space<vmem>>, vector<1x64x32xf32>
    %138 = vector.shape_cast %137 : vector<1x64x32xf32> to vector<64x32xf32>
    %cst_59 = arith.constant dense<0.000000e+00> : vector<8x32xf32>
    %139 = tpu.matmul %136, %138, %cst_59 {dimension_numbers = #tpu.dot_dimension_numbers<[1], [0], [0], [1], [0, 0, 1, 1], [], []>} : vector<8x64xf32>, vector<64x32xf32>, vector<8x32xf32> -> vector<8x32xf32>
    %140 = vector.extract_strided_slice %43 {offsets = [3, 0], sizes = [1, 32], strides = [1, 1]} : vector<6x32xf32> to vector<1x32xf32>
    %141 = vector.broadcast %140 : vector<1x32xf32> to vector<8x32xf32>
    %142 = arith.addf %139, %141 : vector<8x32xf32>
    %143 = arith.addf %142, %121 : vector<8x32xf32>
    %144 = vector.extract_strided_slice %43 {offsets = [4, 0], sizes = [1, 32], strides = [1, 1]} : vector<6x32xf32> to vector<1x32xf32>
    %145 = vector.extract_strided_slice %43 {offsets = [5, 0], sizes = [1, 32], strides = [1, 1]} : vector<6x32xf32> to vector<1x32xf32>
    %cst_60 = arith.constant dense<0.000000e+00> : vector<8xf32>
    %146 = vector.multi_reduction <add>, %143, %cst_60 [1] : vector<8x32xf32> to vector<8xf32>
    %147 = vector.shape_cast %146 : vector<8xf32> to vector<8x1xf32>
    %cst_61 = arith.constant 3.200000e+01 : f32
    %148 = vector.broadcast %cst_61 : f32 to vector<8x1xf32>
    %149 = arith.divf %147, %148 : vector<8x1xf32>
    %150 = vector.broadcast %149 : vector<8x1xf32> to vector<8x32xf32>
    %151 = arith.subf %143, %150 : vector<8x32xf32>
    %152 = arith.mulf %151, %151 : vector<8x32xf32>
    %cst_62 = arith.constant dense<0.000000e+00> : vector<8xf32>
    %153 = vector.multi_reduction <add>, %152, %cst_62 [1] : vector<8x32xf32> to vector<8xf32>
    %154 = vector.shape_cast %153 : vector<8xf32> to vector<8x1xf32>
    %cst_63 = arith.constant 3.200000e+01 : f32
    %155 = vector.broadcast %cst_63 : f32 to vector<8x1xf32>
    %156 = arith.divf %154, %155 : vector<8x1xf32>
    %157 = vector.broadcast %149 : vector<8x1xf32> to vector<8x32xf32>
    %158 = arith.subf %143, %157 : vector<8x32xf32>
    %cst_64 = arith.constant 9.99999996E-13 : f32
    %159 = vector.broadcast %cst_64 : f32 to vector<8x1xf32>
    %160 = arith.addf %156, %159 : vector<8x1xf32>
    %161 = math.rsqrt %160 : vector<8x1xf32>
    %162 = vector.broadcast %161 : vector<8x1xf32> to vector<8x32xf32>
    %163 = arith.mulf %158, %162 : vector<8x32xf32>
    %164 = vector.broadcast %144 : vector<1x32xf32> to vector<8x32xf32>
    %165 = arith.mulf %163, %164 : vector<8x32xf32>
    %166 = vector.broadcast %145 : vector<1x32xf32> to vector<8x32xf32>
    %167 = arith.addf %165, %166 : vector<8x32xf32>
    %c1 = arith.constant 1 : index
    %c0_65 = arith.constant 0 : index
    %c0_66 = arith.constant 0 : index
    %168 = vector.load %arg7[%c1, %c0_65, %c0_66] : memref<2x32x32xf32, #tpu.memory_space<vmem>>, vector<1x32x32xf32>
    %169 = vector.shape_cast %168 : vector<1x32x32xf32> to vector<32x32xf32>
    %c1_67 = arith.constant 1 : index
    %c0_68 = arith.constant 0 : index
    %c0_69 = arith.constant 0 : index
    %170 = vector.load %arg11[%c1_67, %c0_68, %c0_69] : memref<2x6x32xf32, #tpu.memory_space<vmem>>, vector<1x6x32xf32>
    %171 = vector.shape_cast %170 : vector<1x6x32xf32> to vector<6x32xf32>
    %c1_70 = arith.constant 1 : index
    %c0_71 = arith.constant 0 : index
    %c0_72 = arith.constant 0 : index
    %172 = vector.load %arg5[%c1_70, %c0_71, %c0_72] : memref<2x32x96xf32, #tpu.memory_space<vmem>>, vector<1x32x96xf32>
    %173 = vector.shape_cast %172 : vector<1x32x96xf32> to vector<32x96xf32>
    %cst_73 = arith.constant dense<0.000000e+00> : vector<8x96xf32>
    %174 = tpu.matmul %167, %173, %cst_73 {dimension_numbers = #tpu.dot_dimension_numbers<[1], [0], [0], [1], [0, 0, 1, 1], [], []>} : vector<8x32xf32>, vector<32x96xf32>, vector<8x96xf32> -> vector<8x96xf32>
    %c1_74 = arith.constant 1 : index
    %c0_75 = arith.constant 0 : index
    %c0_76 = arith.constant 0 : index
    %175 = vector.load %arg6[%c1_74, %c0_75, %c0_76] : memref<2x1x96xf32, #tpu.memory_space<vmem>>, vector<1x1x96xf32>
    %176 = vector.shape_cast %175 : vector<1x1x96xf32> to vector<1x96xf32>
    %177 = vector.broadcast %176 : vector<1x96xf32> to vector<8x96xf32>
    %178 = arith.addf %174, %177 : vector<8x96xf32>
    %cst_77 = arith.constant 0.000000e+00 : f32
    %179 = vector.broadcast %cst_77 : f32 to vector<8x32xf32>
    %180 = vector.extract_strided_slice %178 {offsets = [0, 0], sizes = [8, 16], strides = [1, 1]} : vector<8x96xf32> to vector<8x16xf32>
    %181 = vector.extract_strided_slice %178 {offsets = [0, 32], sizes = [8, 16], strides = [1, 1]} : vector<8x96xf32> to vector<8x16xf32>
    %182 = vector.extract_strided_slice %178 {offsets = [0, 64], sizes = [8, 16], strides = [1, 1]} : vector<8x96xf32> to vector<8x16xf32>
    %cst_78 = arith.constant dense<0.000000e+00> : vector<8x8xf32>
    %183 = tpu.matmul %180, %181, %cst_78 {dimension_numbers = #tpu.dot_dimension_numbers<[1], [1], [0], [0], [0, 0, 1, 0], [], []>} : vector<8x16xf32>, vector<8x16xf32>, vector<8x8xf32> -> vector<8x8xf32>
    %cst_79 = arith.constant 2.500000e-01 : f32
    %184 = vector.broadcast %cst_79 : f32 to vector<8x8xf32>
    %185 = arith.mulf %183, %184 : vector<8x8xf32>
    %186 = arith.addf %185, %39 : vector<8x8xf32>
    %cst_80 = arith.constant dense<0xFF800000> : vector<8xf32>
    %187 = vector.multi_reduction <maximumf>, %186, %cst_80 [1] : vector<8x8xf32> to vector<8xf32>
    %188 = vector.shape_cast %187 : vector<8xf32> to vector<8x1xf32>
    %189 = vector.broadcast %188 : vector<8x1xf32> to vector<8x8xf32>
    %190 = arith.subf %186, %189 : vector<8x8xf32>
    %191 = math.exp %190 : vector<8x8xf32>
    %cst_81 = arith.constant dense<0.000000e+00> : vector<8xf32>
    %192 = vector.multi_reduction <add>, %191, %cst_81 [1] : vector<8x8xf32> to vector<8xf32>
    %193 = vector.shape_cast %192 : vector<8xf32> to vector<8x1xf32>
    %194 = tpu.reciprocal %193 {approx = true} : vector<8x1xf32> -> vector<8x1xf32>
    %195 = vector.broadcast %194 : vector<8x1xf32> to vector<8x8xf32>
    %196 = arith.mulf %191, %195 : vector<8x8xf32>
    %cst_82 = arith.constant dense<0.000000e+00> : vector<8x16xf32>
    %197 = tpu.matmul %196, %182, %cst_82 {dimension_numbers = #tpu.dot_dimension_numbers<[1], [0], [0], [1], [0, 0, 1, 1], [], []>} : vector<8x8xf32>, vector<8x16xf32>, vector<8x16xf32> -> vector<8x16xf32>
    %198 = vector.extract_strided_slice %169 {offsets = [0, 0], sizes = [16, 32], strides = [1, 1]} : vector<32x32xf32> to vector<16x32xf32>
    %cst_83 = arith.constant dense<0.000000e+00> : vector<8x32xf32>
    %199 = tpu.matmul %197, %198, %cst_83 {dimension_numbers = #tpu.dot_dimension_numbers<[1], [0], [0], [1], [0, 0, 1, 1], [], []>} : vector<8x16xf32>, vector<16x32xf32>, vector<8x32xf32> -> vector<8x32xf32>
    %200 = arith.addf %179, %199 : vector<8x32xf32>
    %201 = vector.extract_strided_slice %178 {offsets = [0, 16], sizes = [8, 16], strides = [1, 1]} : vector<8x96xf32> to vector<8x16xf32>
    %202 = vector.extract_strided_slice %178 {offsets = [0, 48], sizes = [8, 16], strides = [1, 1]} : vector<8x96xf32> to vector<8x16xf32>
    %203 = vector.extract_strided_slice %178 {offsets = [0, 80], sizes = [8, 16], strides = [1, 1]} : vector<8x96xf32> to vector<8x16xf32>
    %cst_84 = arith.constant dense<0.000000e+00> : vector<8x8xf32>
    %204 = tpu.matmul %201, %202, %cst_84 {dimension_numbers = #tpu.dot_dimension_numbers<[1], [1], [0], [0], [0, 0, 1, 0], [], []>} : vector<8x16xf32>, vector<8x16xf32>, vector<8x8xf32> -> vector<8x8xf32>
    %cst_85 = arith.constant 2.500000e-01 : f32
    %205 = vector.broadcast %cst_85 : f32 to vector<8x8xf32>
    %206 = arith.mulf %204, %205 : vector<8x8xf32>
    %207 = arith.addf %206, %39 : vector<8x8xf32>
    %cst_86 = arith.constant dense<0xFF800000> : vector<8xf32>
    %208 = vector.multi_reduction <maximumf>, %207, %cst_86 [1] : vector<8x8xf32> to vector<8xf32>
    %209 = vector.shape_cast %208 : vector<8xf32> to vector<8x1xf32>
    %210 = vector.broadcast %209 : vector<8x1xf32> to vector<8x8xf32>
    %211 = arith.subf %207, %210 : vector<8x8xf32>
    %212 = math.exp %211 : vector<8x8xf32>
    %cst_87 = arith.constant dense<0.000000e+00> : vector<8xf32>
    %213 = vector.multi_reduction <add>, %212, %cst_87 [1] : vector<8x8xf32> to vector<8xf32>
    %214 = vector.shape_cast %213 : vector<8xf32> to vector<8x1xf32>
    %215 = tpu.reciprocal %214 {approx = true} : vector<8x1xf32> -> vector<8x1xf32>
    %216 = vector.broadcast %215 : vector<8x1xf32> to vector<8x8xf32>
    %217 = arith.mulf %212, %216 : vector<8x8xf32>
    %cst_88 = arith.constant dense<0.000000e+00> : vector<8x16xf32>
    %218 = tpu.matmul %217, %203, %cst_88 {dimension_numbers = #tpu.dot_dimension_numbers<[1], [0], [0], [1], [0, 0, 1, 1], [], []>} : vector<8x8xf32>, vector<8x16xf32>, vector<8x16xf32> -> vector<8x16xf32>
    %219 = vector.extract_strided_slice %169 {offsets = [16, 0], sizes = [16, 32], strides = [1, 1]} : vector<32x32xf32> to vector<16x32xf32>
    %cst_89 = arith.constant dense<0.000000e+00> : vector<8x32xf32>
    %220 = tpu.matmul %218, %219, %cst_89 {dimension_numbers = #tpu.dot_dimension_numbers<[1], [0], [0], [1], [0, 0, 1, 1], [], []>} : vector<8x16xf32>, vector<16x32xf32>, vector<8x32xf32> -> vector<8x32xf32>
    %221 = arith.addf %200, %220 : vector<8x32xf32>
    %222 = vector.extract_strided_slice %171 {offsets = [0, 0], sizes = [1, 32], strides = [1, 1]} : vector<6x32xf32> to vector<1x32xf32>
    %223 = vector.broadcast %222 : vector<1x32xf32> to vector<8x32xf32>
    %224 = arith.addf %221, %223 : vector<8x32xf32>
    %225 = arith.addf %224, %167 : vector<8x32xf32>
    %226 = vector.extract_strided_slice %171 {offsets = [1, 0], sizes = [1, 32], strides = [1, 1]} : vector<6x32xf32> to vector<1x32xf32>
    %227 = vector.extract_strided_slice %171 {offsets = [2, 0], sizes = [1, 32], strides = [1, 1]} : vector<6x32xf32> to vector<1x32xf32>
    %cst_90 = arith.constant dense<0.000000e+00> : vector<8xf32>
    %228 = vector.multi_reduction <add>, %225, %cst_90 [1] : vector<8x32xf32> to vector<8xf32>
    %229 = vector.shape_cast %228 : vector<8xf32> to vector<8x1xf32>
    %cst_91 = arith.constant 3.200000e+01 : f32
    %230 = vector.broadcast %cst_91 : f32 to vector<8x1xf32>
    %231 = arith.divf %229, %230 : vector<8x1xf32>
    %232 = vector.broadcast %231 : vector<8x1xf32> to vector<8x32xf32>
    %233 = arith.subf %225, %232 : vector<8x32xf32>
    %234 = arith.mulf %233, %233 : vector<8x32xf32>
    %cst_92 = arith.constant dense<0.000000e+00> : vector<8xf32>
    %235 = vector.multi_reduction <add>, %234, %cst_92 [1] : vector<8x32xf32> to vector<8xf32>
    %236 = vector.shape_cast %235 : vector<8xf32> to vector<8x1xf32>
    %cst_93 = arith.constant 3.200000e+01 : f32
    %237 = vector.broadcast %cst_93 : f32 to vector<8x1xf32>
    %238 = arith.divf %236, %237 : vector<8x1xf32>
    %239 = vector.broadcast %231 : vector<8x1xf32> to vector<8x32xf32>
    %240 = arith.subf %225, %239 : vector<8x32xf32>
    %cst_94 = arith.constant 9.99999996E-13 : f32
    %241 = vector.broadcast %cst_94 : f32 to vector<8x1xf32>
    %242 = arith.addf %238, %241 : vector<8x1xf32>
    %243 = math.rsqrt %242 : vector<8x1xf32>
    %244 = vector.broadcast %243 : vector<8x1xf32> to vector<8x32xf32>
    %245 = arith.mulf %240, %244 : vector<8x32xf32>
    %246 = vector.broadcast %226 : vector<1x32xf32> to vector<8x32xf32>
    %247 = arith.mulf %245, %246 : vector<8x32xf32>
    %248 = vector.broadcast %227 : vector<1x32xf32> to vector<8x32xf32>
    %249 = arith.addf %247, %248 : vector<8x32xf32>
    %c1_95 = arith.constant 1 : index
    %c0_96 = arith.constant 0 : index
    %c0_97 = arith.constant 0 : index
    %250 = vector.load %arg8[%c1_95, %c0_96, %c0_97] : memref<2x32x64xf32, #tpu.memory_space<vmem>>, vector<1x32x64xf32>
    %251 = vector.shape_cast %250 : vector<1x32x64xf32> to vector<32x64xf32>
    %cst_98 = arith.constant dense<0.000000e+00> : vector<8x64xf32>
    %252 = tpu.matmul %249, %251, %cst_98 {dimension_numbers = #tpu.dot_dimension_numbers<[1], [0], [0], [1], [0, 0, 1, 1], [], []>} : vector<8x32xf32>, vector<32x64xf32>, vector<8x64xf32> -> vector<8x64xf32>
    %c1_99 = arith.constant 1 : index
    %c0_100 = arith.constant 0 : index
    %c0_101 = arith.constant 0 : index
    %253 = vector.load %arg9[%c1_99, %c0_100, %c0_101] : memref<2x1x64xf32, #tpu.memory_space<vmem>>, vector<1x1x64xf32>
    %254 = vector.shape_cast %253 : vector<1x1x64xf32> to vector<1x64xf32>
    %255 = vector.broadcast %254 : vector<1x64xf32> to vector<8x64xf32>
    %256 = arith.addf %252, %255 : vector<8x64xf32>
    %cst_102 = arith.constant 5.000000e-01 : f32
    %257 = vector.broadcast %cst_102 : f32 to vector<8x64xf32>
    %258 = arith.mulf %256, %257 : vector<8x64xf32>
    %cst_103 = arith.constant 1.41421354 : f32
    %259 = vector.broadcast %cst_103 : f32 to vector<8x64xf32>
    %260 = arith.divf %256, %259 : vector<8x64xf32>
    %261 = math.erf %260 : vector<8x64xf32>
    %cst_104 = arith.constant 1.000000e+00 : f32
    %262 = vector.broadcast %cst_104 : f32 to vector<8x64xf32>
    %263 = arith.addf %262, %261 : vector<8x64xf32>
    %264 = arith.mulf %258, %263 : vector<8x64xf32>
    %c1_105 = arith.constant 1 : index
    %c0_106 = arith.constant 0 : index
    %c0_107 = arith.constant 0 : index
    %265 = vector.load %arg10[%c1_105, %c0_106, %c0_107] : memref<2x64x32xf32, #tpu.memory_space<vmem>>, vector<1x64x32xf32>
    %266 = vector.shape_cast %265 : vector<1x64x32xf32> to vector<64x32xf32>
    %cst_108 = arith.constant dense<0.000000e+00> : vector<8x32xf32>
    %267 = tpu.matmul %264, %266, %cst_108 {dimension_numbers = #tpu.dot_dimension_numbers<[1], [0], [0], [1], [0, 0, 1, 1], [], []>} : vector<8x64xf32>, vector<64x32xf32>, vector<8x32xf32> -> vector<8x32xf32>
    %268 = vector.extract_strided_slice %171 {offsets = [3, 0], sizes = [1, 32], strides = [1, 1]} : vector<6x32xf32> to vector<1x32xf32>
    %269 = vector.broadcast %268 : vector<1x32xf32> to vector<8x32xf32>
    %270 = arith.addf %267, %269 : vector<8x32xf32>
    %271 = arith.addf %270, %249 : vector<8x32xf32>
    %272 = vector.extract_strided_slice %171 {offsets = [4, 0], sizes = [1, 32], strides = [1, 1]} : vector<6x32xf32> to vector<1x32xf32>
    %273 = vector.extract_strided_slice %171 {offsets = [5, 0], sizes = [1, 32], strides = [1, 1]} : vector<6x32xf32> to vector<1x32xf32>
    %cst_109 = arith.constant dense<0.000000e+00> : vector<8xf32>
    %274 = vector.multi_reduction <add>, %271, %cst_109 [1] : vector<8x32xf32> to vector<8xf32>
    %275 = vector.shape_cast %274 : vector<8xf32> to vector<8x1xf32>
    %cst_110 = arith.constant 3.200000e+01 : f32
    %276 = vector.broadcast %cst_110 : f32 to vector<8x1xf32>
    %277 = arith.divf %275, %276 : vector<8x1xf32>
    %278 = vector.broadcast %277 : vector<8x1xf32> to vector<8x32xf32>
    %279 = arith.subf %271, %278 : vector<8x32xf32>
    %280 = arith.mulf %279, %279 : vector<8x32xf32>
    %cst_111 = arith.constant dense<0.000000e+00> : vector<8xf32>
    %281 = vector.multi_reduction <add>, %280, %cst_111 [1] : vector<8x32xf32> to vector<8xf32>
    %282 = vector.shape_cast %281 : vector<8xf32> to vector<8x1xf32>
    %cst_112 = arith.constant 3.200000e+01 : f32
    %283 = vector.broadcast %cst_112 : f32 to vector<8x1xf32>
    %284 = arith.divf %282, %283 : vector<8x1xf32>
    %285 = vector.broadcast %277 : vector<8x1xf32> to vector<8x32xf32>
    %286 = arith.subf %271, %285 : vector<8x32xf32>
    %cst_113 = arith.constant 9.99999996E-13 : f32
    %287 = vector.broadcast %cst_113 : f32 to vector<8x1xf32>
    %288 = arith.addf %284, %287 : vector<8x1xf32>
    %289 = math.rsqrt %288 : vector<8x1xf32>
    %290 = vector.broadcast %289 : vector<8x1xf32> to vector<8x32xf32>
    %291 = arith.mulf %286, %290 : vector<8x32xf32>
    %292 = vector.broadcast %272 : vector<1x32xf32> to vector<8x32xf32>
    %293 = arith.mulf %291, %292 : vector<8x32xf32>
    %294 = vector.broadcast %273 : vector<1x32xf32> to vector<8x32xf32>
    %295 = arith.addf %293, %294 : vector<8x32xf32>
    %c0_114 = arith.constant 0 : index
    %c0_115 = arith.constant 0 : index
    %296 = vector.load %arg13[%c0_114, %c0_115] : memref<8x32xf32, #tpu.memory_space<vmem>>, vector<8x32xf32>
    tpu.vector_store %arg13[%c0_114, %c0_115], %295 {strides = array<i32>} : memref<8x32xf32, #tpu.memory_space<vmem>>, vector<8x32xf32>,
    %297 = arith.index_cast %arg0 : i32 to index
    %298 = memref.load %arg1[%297] : memref<2xi32, #tpu.memory_space<smem>>
    %c1_i32 = arith.constant 1 : i32
    %299 = arith.subi %298, %c1_i32 : i32
    %300 = arith.index_cast %299 : i32 to index
    %c0_116 = arith.constant 0 : index
    %301 = vector.load %arg13[%300, %c0_116] : memref<8x32xf32, #tpu.memory_space<vmem>>, vector<1x32xf32>
    %c0_117 = arith.constant 0 : index
    %c0_118 = arith.constant 0 : index
    %c0_119 = arith.constant 0 : index
    %302 = vector.load %arg12[%c0_117, %c0_118, %c0_119] : memref<1x1x32xf32, #tpu.memory_space<vmem>>, vector<1x1x32xf32>
    %303 = vector.shape_cast %302 : vector<1x1x32xf32> to vector<1x32xf32>
    %304 = vector.shape_cast %301 : vector<1x32xf32> to vector<1x1x32xf32>
    tpu.vector_store %arg12[%c0_117, %c0_118, %c0_119], %304 {strides = array<i32>} : memref<1x1x32xf32, #tpu.memory_space<vmem>>, vector<1x1x32xf32>,
    return
  }
  func.func @transform_0(%arg0: i32, %arg1: memref<2xi32, #tpu.memory_space<smem>>) -> (i32, i32, i32) {
    %c0_i32 = arith.constant 0 : i32
    %c0_i32_0 = arith.constant 0 : i32
    %c0_i32_1 = arith.constant 0 : i32
    return %arg0, %c0_i32, %c0_i32_0 : i32, i32, i32
  }
  func.func @transform_1(%arg0: i32, %arg1: memref<2xi32, #tpu.memory_space<smem>>) -> (i32, i32, i32) {
    %c0_i32 = arith.constant 0 : i32
    %c0_i32_0 = arith.constant 0 : i32
    %c0_i32_1 = arith.constant 0 : i32
    return %arg0, %c0_i32, %c0_i32_0 : i32, i32, i32
  }
  func.func @transform_2(%arg0: i32, %arg1: memref<2xi32, #tpu.memory_space<smem>>) -> (i32, i32) {
    %c0_i32 = arith.constant 0 : i32
    %c0_i32_0 = arith.constant 0 : i32
    %c0_i32_1 = arith.constant 0 : i32
    return %c0_i32, %c0_i32_0 : i32, i32
  }
  func.func @transform_3(%arg0: i32, %arg1: memref<2xi32, #tpu.memory_space<smem>>) -> (i32, i32, i32) {
    %c0_i32 = arith.constant 0 : i32
    %c0_i32_0 = arith.constant 0 : i32
    %c0_i32_1 = arith.constant 0 : i32
    %c0_i32_2 = arith.constant 0 : i32
    return %c0_i32, %c0_i32_0, %c0_i32_1 : i32, i32, i32
  }
  func.func @transform_4(%arg0: i32, %arg1: memref<2xi32, #tpu.memory_space<smem>>) -> (i32, i32, i32) {
    %c0_i32 = arith.constant 0 : i32
    %c0_i32_0 = arith.constant 0 : i32
    %c0_i32_1 = arith.constant 0 : i32
    %c0_i32_2 = arith.constant 0 : i32
    return %c0_i32, %c0_i32_0, %c0_i32_1 : i32, i32, i32
  }
  func.func @transform_5(%arg0: i32, %arg1: memref<2xi32, #tpu.memory_space<smem>>) -> (i32, i32, i32) {
    %c0_i32 = arith.constant 0 : i32
    %c0_i32_0 = arith.constant 0 : i32
    %c0_i32_1 = arith.constant 0 : i32
    %c0_i32_2 = arith.constant 0 : i32
    return %c0_i32, %c0_i32_0, %c0_i32_1 : i32, i32, i32
  }
  func.func @transform_6(%arg0: i32, %arg1: memref<2xi32, #tpu.memory_space<smem>>) -> (i32, i32, i32) {
    %c0_i32 = arith.constant 0 : i32
    %c0_i32_0 = arith.constant 0 : i32
    %c0_i32_1 = arith.constant 0 : i32
    %c0_i32_2 = arith.constant 0 : i32
    return %c0_i32, %c0_i32_0, %c0_i32_1 : i32, i32, i32
  }
  func.func @transform_7(%arg0: i32, %arg1: memref<2xi32, #tpu.memory_space<smem>>) -> (i32, i32, i32) {
    %c0_i32 = arith.constant 0 : i32
    %c0_i32_0 = arith.constant 0 : i32
    %c0_i32_1 = arith.constant 0 : i32
    %c0_i32_2 = arith.constant 0 : i32
    return %c0_i32, %c0_i32_0, %c0_i32_1 : i32, i32, i32
  }
  func.func @transform_8(%arg0: i32, %arg1: memref<2xi32, #tpu.memory_space<smem>>) -> (i32, i32, i32) {
    %c0_i32 = arith.constant 0 : i32
    %c0_i32_0 = arith.constant 0 : i32
    %c0_i32_1 = arith.constant 0 : i32
    %c0_i32_2 = arith.constant 0 : i32
    return %c0_i32, %c0_i32_0, %c0_i32_1 : i32, i32, i32
  }
  func.func @transform_9(%arg0: i32, %arg1: memref<2xi32, #tpu.memory_space<smem>>) -> (i32, i32, i32) {
    %c0_i32 = arith.constant 0 : i32
    %c0_i32_0 = arith.constant 0 : i32
    %c0_i32_1 = arith.constant 0 : i32
    %c0_i32_2 = arith.constant 0 : i32
    return %c0_i32, %c0_i32_0, %c0_i32_1 : i32, i32, i32
  }
  func.func @transform_10(%arg0: i32, %arg1: memref<2xi32, #tpu.memory_space<smem>>) -> (i32, i32, i32) {
    %c0_i32 = arith.constant 0 : i32
    %c0_i32_0 = arith.constant 0 : i32
    %c0_i32_1 = arith.constant 0 : i32
    return %arg0, %c0_i32, %c0_i32_0 : i32, i32, i32
  }
}

</mosaic_0001>

<bundles_post_ra>
// kernel: tpu_custom_call.1
= control target key start
LH: loop header
LB: loop body
LE: loop exit
PB: predicated region body
PF: predicated region fallthrough
CT: control target
= control target key end

     0   :  { %s3126_s0 = inlined_call_operand.hbm [shape: s32[2], index: 0, kind: input, shape index: {}]   ;;  %s3127_s1 = inlined_call_operand.vmem [shape: s32[2,1,8], index: 1, kind: input, shape index: {}]   ;;  %s3128_s2 = inlined_call_operand.vmem [shape: f32[2,8,32], index: 2, kind: input, shape index: {}]   ;;  %s3129_s3 = inlined_call_operand.vmem [shape: f32[10,32], index: 3, kind: input, shape index: {}]   ;;  %s3130_s4 = inlined_call_operand.vmem [shape: f32[2,32,96], index: 4, kind: input, shape index: {}]   ;;  %s3131_s5 = inlined_call_operand.vmem [shape: f32[2,1,96], index: 5, kind: input, shape index: {}]   ;;  %s3132_s6 = inlined_call_operand.vmem [shape: f32[2,32,32], index: 6, kind: input, shape index: {}]   ;;  %s3133_s7 = inlined_call_operand.vmem [shape: f32[2,32,64], index: 7, kind: input, shape index: {}]   ;;  %s3134_s8 = inlined_call_operand.vmem [shape: f32[2,1,64], index: 8, kind: input, shape index: {}]   ;;  %s3135_s9 = inlined_call_operand.vmem [shape: f32[2,64,32], index: 9, kind: input, shape index: {}]   ;;  %s3136_s10 = inlined_call_operand.vmem [shape: f32[2,6,32], index: 10, kind: input, shape index: {}]   ;;  %s3137_s11 = inlined_call_operand.hbm [shape: f32[2,1,32], index: 11, kind: output, shape index: {}]  }
   0x1   :  { %3140 = sst [smem:[#allocation9_spill]] %s3127_s1  ;;  %s2524_s19 = scalar_lea.hbm %s3126_s0, 16 }
   0x2   :  { %p2525_p0 = scmp.ne.s32.totalorder %s3126_s0, %s2524_s19  ;;  %p2528_p1 = scmp.lt.u32.totalorder %s2524_s19, %s3126_s0 }
   0x4   :  { %p2530_p2 = pnand %p2528_p1, %p2525_p0 }
   0x6   :  { %2533 = shalt.err (!%p2530_p2)  }
   0x7   :  { %s2600_s24 = smov [#allocation4]  }
   0x8   :  { %17 = dma.hbm_to_smem %s3126_s0, 16, %s2600_s24, [#allocation3] }
   0x9   :  { %2578 = dma.done.wait [#allocation3], 16 }
   0xa   :  { %2579 = vsyncadd [#allocation3], 4294967280 }
   0xb   :  { %19 = sfence }
   0xc   :  { %20 = vsyncpa [#allocation6], 0 }
   0xd   :  { %22 = vsyncpa [#allocation6 + $0x1], 0  ;;  %s2684_s27 = smov 0   ;;  %s2686_s28 = smov 0  }
   0xe   :  { %s2688_s29 = smov 0   ;;  %s2690_s30 = smov 0  }
   0xf LB: > { %s2705_s0 = sadd.s32 4294967295, %s2598_s30   ;;  %s2104_s12 = sadd.s32 4294967294, %s2598_s30   ;;  %s2598_s30 = sphi %s2690_s30, %s3149_s30   ;;  %s2594_s29 = sphi %s2688_s29, %s3148_s29   ;;  %s2590_s28 = sphi %s2686_s28, %s3147_s28   ;;  %s2586_s27 = sphi %s2684_s27, %s3146_s27  }
  0x10   : > { %s2709_s13 = sadd.s32 1, %s2598_s30   ;;  %s255_s14 = sadd.s32 1, %s2594_s29 }
  0x11   : > { %s252_s15 = ssub.s32 %s2598_s30, %s2709_s13  ;;  %p265_p3 = scmp.ne.s32.totalorder %s2594_s29, %s2590_s28 }
  0x12   : > { %p253_p4 = scmp.eq.s32.totalorder %s252_s15, 0  ;;  %p266_p5 = scmp.eq.s32.totalorder %s2705_s0, 1 }
  0x13   : > { %p271_p6 = scmp.ne.s32.totalorder %s2590_s28, %s2586_s27  ;;  %p272_p7 = scmp.eq.s32.totalorder %s2104_s12, 1 }
  0x14   : > { %s2720_s16 = scalar_select %p253_p4, %s2594_s29, %s255_s14  }
  0x15   : > { %p2722_p8 = por %p266_p5, %p265_p3  ;;  %p2726_p9 = por %p272_p7, %p271_p6 }
  0x16   : > { %p2107_p10 = scmp.ge.s32.totalorder %s2598_s30, 1  ;;  %p327_p11 = scmp.lt.s32.totalorder %s2598_s30, 3 }
  0x18   : > { %p328_p12 = pnand %p2107_p10, %p327_p11 }
  0x19   : > { %p366_p13 = scmp.lt.s32.totalorder (!%p328_p12), %s2705_s0, 1  ;;  %v373_v0 = vld [vmem:[%s3129_s3] sm:$0xff] (!%p328_p12)  ;;  %vm378_vm0 = vcmask (!%p328_p12), 261120   ;;  %v424_v10 = vld [vmem:[%s3130_s4 + $0x8] sm:$0xff] (!%p328_p12)  ;;  %v425_v11 = vld [vmem:[%s3130_s4 + $0x10] sm:$0xff] (!%p328_p12)  ;;  %v2601_v12 = vmov (!%p328_p12), 0.0|0.0   ;;  %v405_v33 = vlaneseq (!%p328_p12) }
  0x1a   : > { %331 = sbr.rel (%p328_p12) target bundleno = 5113 (0x13f9), region = 60  ;;  %v423_v9 = vld [vmem:[%s3130_s4] sm:$0xff] (!%p328_p12)  ;;  %2384 = vmatprep.subr.bf16.mxu0 (!%p328_p12), %v2601_v12  ;;  %v426_v14 = vld [vmem:[%s3130_s4 + $0x18] sm:$0xff] (!%p328_p12)  ;;  %vm2602_vm1 = vmmov (!%p328_p12), 0   ;;  %v2603_v15 = vmov (!%p328_p12), 0.0   ;;  %s2605_s21 = smov (!%p328_p12), 96  }
  0x1b   : > { %v2385_v13 = vpack.c.bf16 (!%p328_p12), %v424_v10, %v423_v9  ;;  %2242 = vmatprep.mubr.msk.f32.mxu0 (!%p328_p12), %vm2602_vm1, %v2603_v15  ;;  %2250 = vmatprep.subr.mxu1 (!%p328_p12), %v2603_v15  ;;  %v2388_v16 = vpack.c.bf16 (!%p328_p12), %v426_v14, %v425_v11  ;;  %v2109_v21 = vld [vmem:[%s3129_s3 + $0x8] ss:$0 sm:$0xff] (!%p328_p12)  ;;  %v2110_v23 = vld [vmem:[%s3129_s3 + $0x9] ss:$0 sm:$0xff] (!%p328_p12)  ;;  %v2111_v26 = vld [vmem:[%s3131_s5] ss:$0 sm:$0xff] (!%p328_p12) }
  0x1c   : > { %2252 = vmatprep.mubr.msk.f32.mxu1 (!%p328_p12), %vm2602_vm1, %v2603_v15  ;;  %s2606_s22 = smov (!%p328_p12), 80   ;;  %vm510_vm2 = vcmask (!%p328_p12), 130048   ;;  %s3143_s1 = sld [smem:[#allocation9_spill]] (!%p328_p12)  ;;  %v2803_v35 = vshrl.u32 (!%p328_p12), %v405_v33, 7  ;;  %v2607_v37 = vmov (!%p328_p12), 0   ;;  %v408_v39 = vand.u32 (!%p328_p12), 127, %v405_v33 }
  0x1d   : > { %2386 = vmatpush3.bf16.msra.mxu0 (!%p328_p12), %v2385_v13  ;;  %v2608_v42 = vmov (!%p328_p12), -10000.0   ;;  %vm587_vm7 = vcmask (!%p328_p12), 64512   ;;  %s3138_s26 = smov (!%p328_p12), 64   ;;  %v420_v10 = vld [vmem:[%s3132_s6 + $0x10] sm:$0xff] (!%p328_p12)  ;;  %v421_v11 = vld [vmem:[%s3132_s6 + $0x18] sm:$0xff] (!%p328_p12)  ;;  %vm1119_vm8 = vcmask (!%p328_p12), 523264  }
  0x1e   : > { %2387 = vmatprep.subr.bf16.mxu0 (!%p328_p12), %v2601_v12  ;;  %v2806_v36 = vsub.s32 (!%p328_p12), 0, %v2803_v35  ;;  %vm409_vm4 = vcmp.le.s32.totalorder (!%p328_p12), %v408_v39, %v2803_v35  ;;  %v2391_v13 = vpack.c.bf16 (!%p328_p12), %v421_v11, %v420_v10  ;;  %v1117_v11 = vsub.s32 (!%p328_p12), 3, %v2803_v35  ;;  %s2020_s15 = sld [smem:[#allocation4 + %s2705_s0]] (!%p328_p12)  ;;  %s364_s23 = sand.u32 (!%p328_p12), 1, %s2590_s28  }
  0x1f   : > { %vm2024_vm9 = vcmask (!%p328_p12), 253952   ;;  %s2027_s12 = scalar_lea.sflag (!%p328_p12), [#allocation6], %s364_s23 }
  0x21   : > { %s2734_s19 = scalar_select %p366_p13, %s2705_s0, 1  ;;  %2389 = vmatpush3.bf16.msra.mxu0 %v2388_v16 }
  0x22   : > { %2245 = vmatprep.subr.mxu0 %v2603_v15 }
  0x23   : > { %s2108_s20 = sshll.u32 %s2734_s19, 3 }
  0x24   : > { %s372_s25 = scalar_lea.vmem %s3128_s2, %s2108_s20  ;;  %s2604_s20 = smov 112  }
  0x25   : > { %v376_v1 = vld [vmem:[%s372_s25] sm:$0xff]  ;;  %s368_s25 = scalar_lea.vmem %s3143_s1, %s2734_s19  ;;  %s3139_s19 = smov 48  }
  0x26   : > { %v377_v2 = vadd.f32 %v376_v1, %v373_v0  ;;  %v403_v34 = vld [vmem:[%s368_s25] sm:$0x1] }
  0x27   : > { %vm404_vm3 = vcmp.ne.s32.totalorder %v403_v34, 0 }
  0x28   : > { %v379_v3 = vsel %vm378_vm0, %v377_v2, 0.0  ;;  %v410_v38 = vsel %vm404_vm3, 1, %v2607_v37  ;;  %v1017_v37 = vld [vmem:[%s3133_s7] sm:$0xff] }
  0x29   : > { %380 = vadd.xlane.f32.xlu0 %v379_v3  ;;  %v414_v40 = vrot.slane %v410_v38, %v2806_v36  ;;  %v1018_v38 = vld [vmem:[%s3133_s7 + $0x8] sm:$0xff] }
  0x2a   : > { %v2397_v39 = vpack.c.bf16 %v1018_v38, %v1017_v37  ;;  %v1209_v38 = vsub.s32 4, %v2803_v35 }
  0x2b   : > { %vm415_vm5 = vcmp.eq.s32.totalorder %v414_v40, 1  ;;  %v1020_v40 = vld [vmem:[%s3133_s7 + $0x18] sm:$0xff] }
  0x2c   : > { %vm416_vm6 = vmand %vm409_vm4, %vm415_vm5 }
  0x2d   : > { %v2810_v43 = vsel %vm416_vm6, 0.0, %v2608_v42 }
  0xb6   : > { %v381_v4 = vpop.xlane.xlu0 %380 }
  0xb7   : > { %v383_v5 = vmul.f32 0.03125, %v381_v4  ;;  %v418_v4 = vld [vmem:[%s3132_s6] sm:$0xff] }
  0xb9   : > { %v384_v6 = vsub.f32 %v377_v2, %v383_v5  ;;  %v419_v5 = vld [vmem:[%s3132_s6 + $0x8] sm:$0xff] }
  0xbb   : > { %v385_v7 = vmul.f32 %v384_v6, %v384_v6 }
  0xbd   : > { %v386_v8 = vsel %vm378_vm0, %v385_v7, 0.0 }
  0xbe   : > { %387 = vadd.xlane.f32.xlu0 %v386_v8  ;;  %v2394_v8 = vpack.c.bf16 %v419_v5, %v418_v4 }
 0x14b   : > { %v388_v17 = vpop.xlane.xlu0 %387 }
 0x14c   : > { %v389_v18 = vmul.f32 0.03125, %v388_v17 }
 0x14e   : > { %v390_v19 = vadd.f32 1e-12, %v389_v18 }
 0x150   : > { %2494 = vrsqrt.f32 %v390_v19 }
 0x15a   : > { %v2495_v20 = vpop.eup %2494 }
 0x15b   : > { %v392_v22 = vmul.f32 %v2495_v20, %v384_v6  ;;  %v2853_v20 = vld [vmem:[%s3136_s10] sm:$0x3f] }
 0x15d   : > { %v397_v24 = vmul.f32 %v2109_v21, %v392_v22  ;;  %v991_v22 = vrot.slane %v2853_v20, %v2806_v36 }
 0x15f   : > { %v2771_v25 = vadd.f32 %v2110_v23, %v397_v24 }
 0x161   : > { %2243 = vmatmul.mubr.msk.f32.vlgmr.msra.gmra.mrb[0].mxu0 %vm378_vm0, %v2771_v25 }
 0x162   : > { %2247 = vmatprep.mubr.msk.f32.mxu0 %vm2602_vm1, %v2603_v15 }
 0x234   : > { %v503_v27 = vpop.f32.mrb[0].mxu0 }
 0x235   : > { %v2780_v28 = vadd.f32 %v2111_v26, %v503_v27  ;;  %v2244_v29 = vpop.f32.mrb[1].mxu0 }
 0x237   : > { %675 = vrot.lane.b32.xlu0 %v2780_v28, %s2604_s20  ;;  %508 = vrot.lane.b32.xlu1 %v2780_v28, %s2605_s21 }
 0x23b   : > { %677 = vrot.lane.b32.xlu1 %v2780_v28, %s2606_s22 }
 0x2a9   : > { %v509_v30 = vpop.permute.xlu1 %508  ;;  %v676_v32 = vpop.permute.xlu0 %675 }
 0x2aa   : > { %2246 = vmatpush3.xpose.msk.msra.mxu0 %vm510_vm2, %v509_v30 }
 0x2ab   : > { %2255 = vmatprep.subr.mxu0 %v2603_v15 }
 0x2ad   : > { %2248 = vmatmul.mubr.msk.f32.vlgmr.msra.gmra.mrb[2].mxu0 %vm510_vm2, %v2780_v28  ;;  %v678_v31 = vpop.permute.xlu1 %677 }
 0x2ae   : > { %2256 = vmatpush3.xpose.msk.msra.mxu0 %vm510_vm2, %v678_v31  ;;  %2257 = vmatprep.mubr.msk.f32.mxu0 %vm2602_vm1, %v2603_v15 }
 0x2af   : > { %2390 = vmatprep.subr.bf16.mxu0 %v2601_v12 }
 0x2b1   : > { %2258 = vmatmul.mubr.msk.f32.vlgmr.msra.gmra.mrb[4].mxu0 %vm510_vm2, %v676_v32 }
 0x2b2   : > { %2269 = vmatprep.mubr.msk.f32.mxu0 %vm2602_vm1, %v2603_v15  ;;  %2392 = vmatpush3.bf16.msra.mxu0 %v2391_v13  ;;  %v1118_v13 = vrot.slane %v2853_v20, %v1117_v11 }
 0x2b3   : > { %2396 = vmatprep.subr.bf16.mxu0 %v2601_v12 }
 0x380   : > { %v581_v41 = vpop.f32.mrb[2].mxu0 }
 0x381   : > { %v585_v44 = vmul.f32 0.25, %v581_v41  ;;  %v2249_v45 = vpop.f32.mrb[3].mxu0 }
 0x383   : > { %v586_v46 = vadd.f32 %v585_v44, %v2810_v43 }
 0x384   : > { %v749_v47 = vpop.f32.mrb[4].mxu0 }
 0x385   : > { %v753_v48 = vmul.f32 0.25, %v749_v47  ;;  %v2259_v49 = vpop.f32.mrb[5].mxu0  ;;  %v588_v50 = vsel %vm587_vm7, %v586_v46, -inf  ;;  %v1014_v47 = vsub.s32 2, %v2803_v35 }
 0x386   : > { %589 = vmax.xlane.f32.xlu1 %v588_v50 }
 0x387   : > { %v754_v51 = vadd.f32 %v753_v48, %v2810_v43 }
 0x389   : > { %v755_v52 = vsel %vm587_vm7, %v754_v51, -inf }
 0x38a   : > { %756 = vmax.xlane.f32.xlu0 %v755_v52 }
 0x3a0   : > { %766 = vrot.lane.b32.xlu0 %v2780_v28, %s3139_s19  ;;  %s2162_s19 = sshll.u32 %s2705_s0, 4  ;;  %s2611_s0 = smov [#allocation5]  }
 0x3a1   : > { %s2538_s1 = sshll.u32 %s2611_s0, 4  ;;  %s2539_s1 = int_to_ptr.vmem [resolvable:$false] %s2538_s1 }
 0x3a2   : > { %s2540_s25 = scalar_lea.vmem %s2539_s1, 32 }
 0x413   : > { %v590_v53 = vpop.xlane.xlu1 %589 }
 0x414   : > { %v591_v54 = vsub.f32 %v586_v46, %v590_v53  ;;  %v1009_v46 = vsub.s32 1, %v2803_v35 }
 0x416   : > { %v592_v55 = vmul.f32 1.442695, %v591_v54  ;;  %v1010_v48 = vrot.slane %v2853_v20, %v1009_v46  ;;  %v1107_v54 = vld [vmem:[%s3135_s9] sm:$0xff] }
 0x417   : > { %v757_v56 = vpop.xlane.xlu0 %756 }
 0x418   : > { %2496 = vpow2.f32 %v592_v55  ;;  %v758_v57 = vsub.f32 %v754_v51, %v757_v56  ;;  %v1015_v51 = vrot.slane %v2853_v20, %v1014_v47  ;;  %v1108_v55 = vld [vmem:[%s3135_s9 + $0x8] sm:$0xff] }
 0x419   : > { %v2403_v56 = vpack.c.bf16 %v1108_v55, %v1107_v54 }
 0x41a   : > { %v759_v58 = vmul.f32 1.442695, %v758_v57  ;;  %v1109_v57 = vld [vmem:[%s3135_s9 + $0x10] sm:$0xff] }
 0x41b   : > { %v767_v6 = vpop.permute.xlu0 %766 }
 0x41c   : > { %2498 = vpow2.f32 %v759_v58  ;;  %v1110_v58 = vld [vmem:[%s3135_s9 + $0x18] sm:$0xff] }
 0x422   : > { %v2497_v59 = vpop.eup %2496 }
 0x423   : > { %v594_v60 = vsel %vm587_vm7, %v2497_v59, 0.0 }
 0x424   : > { %595 = vadd.xlane.f32.xlu1 %v594_v60  ;;  %v1111_v60 = vld [vmem:[%s3135_s9 + $0x20] sm:$0xff] }
 0x426   : > { %v2499_v61 = vpop.eup %2498 }
 0x427   : > { %v761_v62 = vsel %vm587_vm7, %v2499_v61, 0.0 }
 0x428   : > { %762 = vadd.xlane.f32.xlu1 %v761_v62 }
 0x439   : > { %599 = vrot.lane.b32.xlu1 %v2780_v28, %s3138_s26  ;;  %s365_s26 = scalar_lea.vmem [#allocation5], %s364_s23 }
 0x43a   : > { %s2039_s24 = sshll.u32 %s365_s26, 4  ;;  %s3086_s24 = int_to_ptr.vmem [resolvable:$true] %s2039_s24 }
 0x43b   : > { %s2534_s14 = scalar_lea.vmem %s3086_s24, 16  ;;  %p2541_p3 = scmp.lt.s32.totalorder %s3086_s24, %s2539_s1 }
 0x43c   : > { %p2535_p0 = scmp.ne.s32.totalorder %s3086_s24, %s2534_s14  ;;  %p2542_p4 = scmp.lt.s32.totalorder %s2540_s25, %s2534_s14 }
 0x43e   : > { %p2536_p1 = pnand %p2535_p0, %p2722_p8  ;;  %p2543_p5 = por %p2542_p4, %p2541_p3 }
 0x440   : > { %p2537_p2 = pneg %p2536_p1 }
 0x442   : > { %p2544_p6 = pnand %p2543_p5, %p2537_p2 }
 0x4b1   : > { %v596_v63 = vpop.xlane.xlu1 %595 }
 0x4b2   : > { %2500 = vrcp.f32 %v596_v63  ;;  %v1113_v63 = vld [vmem:[%s3135_s9 + $0x30] sm:$0xff] }
 0x4b5   : > { %v763_v0 = vpop.xlane.xlu1 %762 }
 0x4b6   : > { %2502 = vrcp.f32 %v763_v0  ;;  %v1114_v0 = vld [vmem:[%s3135_s9 + $0x38] sm:$0xff] }
 0x4b9   : > { %v600_v1 = vpop.permute.xlu1 %599 }
 0x4ba   : > { %2251 = vmatpush3.msra.mxu1 %v600_v1  ;;  %v2412_v1 = vpack.c.bf16 %v1114_v0, %v1113_v63 }
 0x4bb   : > { %2260 = vmatprep.subr.mxu1 %v2603_v15 }
 0x4bc   : > { %v2501_v2 = vpop.eup %2500 }
 0x4bd   : > { %v598_v3 = vmul.f32 %v2501_v2, %v2497_v59  ;;  %v2406_v59 = vpack.c.bf16 %v1110_v58, %v1109_v57  ;;  %v2121_v2 = vld [vmem:[%s3134_s8] ss:$0 sm:$0xff] }
 0x4bf   : > { %2253 = vmatmul.mubr.msk.f32.vlgmr.msra.gmra.mrb[0].mxu1 %vm587_vm7, %v598_v3 }
 0x4c0   : > { %v2503_v7 = vpop.eup %2502  ;;  %2261 = vmatpush3.msra.mxu1 %v767_v6  ;;  %2262 = vmatprep.mubr.msk.f32.mxu1 %vm2602_vm1, %v2603_v15 }
 0x4c1   : > { %v765_v9 = vmul.f32 %v2503_v7, %v2499_v61  ;;  %2393 = vmatprep.subr.bf16.mxu1 %v2601_v12  ;;  %v1112_v61 = vld [vmem:[%s3135_s9 + $0x28] sm:$0xff] }
 0x4c2   : > { %v2409_v62 = vpack.c.bf16 %v1112_v61, %v1111_v60 }
 0x4c3   : > { %2263 = vmatmul.mubr.msk.f32.vlgmr.msra.gmra.mrb[2].mxu1 %vm587_vm7, %v765_v9 }
 0x4c4   : > { %2395 = vmatpush3.bf16.msra.mxu1 %v2394_v8  ;;  %2276 = vmatprep.mubr.msk.f32.mxu1 %vm2602_vm1, %v2603_v15 }
 0x4c5   : > { %2402 = vmatprep.subr.bf16.mxu1 %v2601_v12 }
 0x592   : > { %v671_v14 = vpop.f32.mrb[0].mxu1 }
 0x593   : > { %v2254_v16 = vpop.f32.mrb[1].mxu1  ;;  %2277 = vmatmul.mubr.msk.f32.vlgmr.msra.gmra.mrb[4].mxu1 %vm510_vm2, %v671_v14 }
 0x594   : > { %2306 = vmatprep.mubr.msk.f32.mxu1 %vm2602_vm1, %v2603_v15  ;;  %2404 = vmatpush3.bf16.msra.mxu1 %v2403_v56 }
 0x595   : > { %2405 = vmatprep.subr.bf16.mxu1 %v2601_v12 }
 0x596   : > { %v838_v17 = vpop.f32.mrb[2].mxu1 }
 0x597   : > { %v2264_v18 = vpop.f32.mrb[3].mxu1  ;;  %2270 = vmatmul.mubr.msk.f32.vlgmr.msra.gmra.mrb[6].mxu0 %vm510_vm2, %v838_v17 }
 0x598   : > { %2287 = vmatprep.mubr.msk.f32.mxu0 %vm2602_vm1, %v2603_v15  ;;  %2398 = vmatpush3.bf16.msra.mxu0 %v2397_v39  ;;  %v1214_v39 = vsub.s32 5, %v2803_v35 }
 0x599   : > { %2399 = vmatprep.subr.bf16.mxu0 %v2601_v12  ;;  %2407 = vmatpush3.bf16.msra.mxu1 %v2406_v59 }
 0x59a   : > { %2408 = vmatprep.subr.bf16.mxu1 %v2601_v12 }
 0x59d   : > { %2410 = vmatpush3.bf16.msra.mxu1 %v2409_v62 }
 0x59e   : > { %2411 = vmatprep.subr.bf16.mxu1 %v2601_v12 }
 0x5a1   : > { %2413 = vmatpush3.bf16.msra.mxu1 %v2412_v1 }
 0x5a2   : > { %2325 = vmatprep.subr.mxu1 %v2603_v15 }
 0x666   : > { %v984_v19 = vpop.f32.mrb[4].mxu1 }
 0x667   : > { %v2278_v21 = vpop.f32.mrb[5].mxu1 }
 0x66a   : > { %v911_v23 = vpop.f32.mrb[6].mxu0 }
 0x66b   : > { %v985_v24 = vadd.f32 %v984_v19, %v911_v23  ;;  %v2271_v26 = vpop.f32.mrb[7].mxu0 }
 0x66d   : > { %v992_v27 = vadd.f32 %v991_v22, %v985_v24 }
 0x66f   : > { %v993_v28 = vadd.f32 %v992_v27, %v2771_v25  ;;  %v1019_v25 = vld [vmem:[%s3133_s7 + $0x10] sm:$0xff]  ;;  %v2129_v27 = vld [vmem:[%s3130_s4 + $0x20] sm:$0xff] }
 0x670   : > { %v2400_v41 = vpack.c.bf16 %v1020_v40, %v1019_v25  ;;  %v1210_v25 = vrot.slane %v2853_v20, %v1209_v38 }
 0x671   : > { %v994_v29 = vsel %vm378_vm0, %v993_v28, 0.0 }
 0x672   : > { %995 = vadd.xlane.f32.xlu1 %v994_v29  ;;  %2401 = vmatpush3.bf16.msra.mxu0 %v2400_v41 }
 0x673   : > { %2414 = vmatprep.subr.bf16.mxu0 %v2601_v12 }
 0x6ff   : > { %v996_v30 = vpop.xlane.xlu1 %995 }
 0x700   : > { %v997_v31 = vmul.f32 0.03125, %v996_v30  ;;  %v2131_v30 = vld [vmem:[%s3130_s4 + $0x30] sm:$0xff] }
 0x702   : > { %v998_v32 = vsub.f32 %v993_v28, %v997_v31  ;;  %v2130_v28 = vld [vmem:[%s3130_s4 + $0x28] sm:$0xff]  ;;  %v2132_v31 = vld [vmem:[%s3130_s4 + $0x38] sm:$0xff] }
 0x703   : > { %v2415_v29 = vpack.c.bf16 %v2130_v28, %v2129_v27 }
 0x704   : > { %v999_v33 = vmul.f32 %v998_v32, %v998_v32 }
 0x706   : > { %v1000_v34 = vsel %vm378_vm0, %v999_v33, 0.0 }
 0x707   : > { %1001 = vadd.xlane.f32.xlu0 %v1000_v34 }
 0x794   : > { %v1002_v42 = vpop.xlane.xlu0 %1001 }
 0x795   : > { %v1003_v44 = vmul.f32 0.03125, %v1002_v42  ;;  %v1215_v42 = vrot.slane %v2853_v20, %v1214_v39 }
 0x797   : > { %v1004_v45 = vadd.f32 1e-12, %v1003_v44 }
 0x799   : > { %2504 = vrsqrt.f32 %v1004_v45 }
 0x7a3   : > { %v2505_v49 = vpop.eup %2504 }
 0x7a4   : > { %v1006_v50 = vmul.f32 %v2505_v49, %v998_v32  ;;  %v2418_v32 = vpack.c.bf16 %v2132_v31, %v2131_v30 }
 0x7a6   : > { %v1011_v52 = vmul.f32 %v1010_v48, %v1006_v50  ;;  %v2134_v48 = vld [vmem:[%s3131_s5 + $0x1] ss:$0 sm:$0xff] }
 0x7a8   : > { %v1016_v53 = vadd.f32 %v1015_v51, %v1011_v52 }
 0x7aa   : > { %2288 = vmatmul.mubr.msk.f32.vlgmr.msra.gmra.mrb[8].mxu0 %vm378_vm0, %v1016_v53 }
 0x7ab   : > { %2317 = vmatprep.mubr.msk.f32.mxu0 %vm2602_vm1, %v2603_v15  ;;  %2416 = vmatpush3.bf16.msra.mxu0 %v2415_v29 }
 0x7ac   : > { %2417 = vmatprep.subr.bf16.mxu0 %v2601_v12 }
 0x7af   : > { %2419 = vmatpush3.bf16.msra.mxu0 %v2418_v32 }
 0x7b0   : > { %2320 = vmatprep.subr.mxu0 %v2603_v15 }
 0x87d   : > { %v1097_v3 = vpop.f32.mrb[8].mxu0 }
 0x87e   : > { %v1098_v4 = vadd.f32 %v2121_v2, %v1097_v3  ;;  %v2289_v5 = vpop.f32.mrb[9].mxu0 }
 0x880   : > { %v1103_v6 = vmul.f32 0.70710677, %v1098_v4  ;;  %v1101_v8 = vmul.f32 0.5, %v1098_v4 }
 0x882   : > { %2506 = verf.f32 %v1103_v6 }
 0x88c   : > { %v2507_v7 = vpop.eup %2506 }
 0x88d   : > { %v1105_v9 = vadd.f32 1.0, %v2507_v7 }
 0x88f   : > { %v1106_v10 = vmul.f32 %v1105_v9, %v1101_v8 }
 0x891   : > { %2307 = vmatmul.mubr.msk.f32.vlgmr.msra.gmra.mrb[6].mxu1 %vm1119_vm8, %v1106_v10 }
 0x892   : > { %2327 = vmatprep.mubr.msk.f32.mxu1 %vm2602_vm1, %v2603_v15 }
 0x964   : > { %v1189_v14 = vpop.f32.mrb[6].mxu1 }
 0x965   : > { %v1190_v16 = vadd.f32 %v1189_v14, %v1118_v13  ;;  %v2308_v17 = vpop.f32.mrb[7].mxu1 }
 0x966   : > { %v2124_v17 = vld [vmem:[%s3132_s6 + $0x20] sm:$0xff] }
 0x967   : > { %v1193_v18 = vadd.f32 %v1190_v16, %v1016_v53 }
 0x969   : > { %v1194_v19 = vsel %vm378_vm0, %v1193_v18, 0.0 }
 0x96a   : > { %1195 = vadd.xlane.f32.xlu1 %v1194_v19 }
 0x9f7   : > { %v1196_v21 = vpop.xlane.xlu1 %1195 }
 0x9f8   : > { %v1197_v22 = vmul.f32 0.03125, %v1196_v21 }
 0x9fa   : > { %v1198_v23 = vsub.f32 %v1193_v18, %v1197_v22  ;;  %v2125_v18 = vld [vmem:[%s3132_s6 + $0x28] sm:$0xff] }
 0x9fb   : > { %v2424_v22 = vpack.c.bf16 %v2125_v18, %v2124_v17 }
 0x9fc   : > { %v1199_v24 = vmul.f32 %v1198_v23, %v1198_v23 }
 0x9fe   : > { %v1200_v26 = vsel %vm378_vm0, %v1199_v24, 0.0  ;;  %v2126_v24 = vld [vmem:[%s3132_s6 + $0x30] sm:$0xff] }
 0x9ff   : > { %1201 = vadd.xlane.f32.xlu1 %v1200_v26  ;;  %v2127_v26 = vld [vmem:[%s3132_s6 + $0x38] sm:$0xff] }
 0xa00   : > { %v2421_v27 = vpack.c.bf16 %v2127_v26, %v2126_v24 }
 0xa8c   : > { %v1202_v33 = vpop.xlane.xlu1 %1201 }
 0xa8d   : > { %v1203_v34 = vmul.f32 0.03125, %v1202_v33  ;;  %v3008_v33 = vld [vmem:[%s3136_s10 + $0x8] sm:$0x3f] }
 0xa8f   : > { %v1204_v37 = vadd.f32 1e-12, %v1203_v34 }
 0xa91   : > { %2508 = vrsqrt.f32 %v1204_v37  ;;  %v1792_v37 = vrot.slane %v3008_v33, %v2806_v36  ;;  %v2144_v36 = vld [vmem:[%s3133_s7 + $0x20] sm:$0xff] }
 0xa9b   : > { %v2509_v40 = vpop.eup %2508 }
 0xa9c   : > { %v1206_v41 = vmul.f32 %v2509_v40, %v1198_v23 }
 0xa9e   : > { %v1211_v44 = vmul.f32 %v1210_v25, %v1206_v41 }
 0xaa0   : > { %v2947_v45 = vadd.f32 %v1215_v42, %v1211_v44 }
 0xaa2   : > { %2318 = vmatmul.mubr.msk.f32.vlgmr.msra.gmra.mrb[10].mxu0 %vm378_vm0, %v2947_v45 }
 0xaa3   : > { %2322 = vmatprep.mubr.msk.f32.mxu0 %vm2602_vm1, %v2603_v15 }
 0xb75   : > { %v1306_v49 = vpop.f32.mrb[10].mxu0 }
 0xb76   : > { %v1307_v50 = vadd.f32 %v2134_v48, %v1306_v49  ;;  %v2319_v51 = vpop.f32.mrb[11].mxu0 }
 0xb78   : > { %1478 = vrot.lane.b32.xlu0 %v1307_v50, %s2606_s22  ;;  %1311 = vrot.lane.b32.xlu1 %v1307_v50, %s2605_s21  ;;  %s3145_s21 = smov 64   ;;  %s2165_s22 = scalar_lea.vmem [#allocation2], %s2020_s15 }
 0xb7c   : > { %1476 = vrot.lane.b32.xlu1 %v1307_v50, %s2604_s20  ;;  %s3144_s20 = smov 48  }
 0xbea   : > { %v1312_v20 = vpop.permute.xlu1 %1311  ;;  %v1479_v52 = vpop.permute.xlu0 %1478 }
 0xbeb   : > { %2321 = vmatpush3.xpose.msk.msra.mxu0 %vm510_vm2, %v1312_v20 }
 0xbec   : > { %2330 = vmatprep.subr.mxu0 %v2603_v15 }
 0xbee   : > { %2323 = vmatmul.mubr.msk.f32.vlgmr.msra.gmra.mrb[12].mxu0 %vm510_vm2, %v1307_v50  ;;  %v1477_v53 = vpop.permute.xlu1 %1476 }
 0xbef   : > { %2331 = vmatpush3.xpose.msk.msra.mxu0 %vm510_vm2, %v1479_v52  ;;  %2332 = vmatprep.mubr.msk.f32.mxu0 %vm2602_vm1, %v2603_v15  ;;  %v2145_v52 = vld [vmem:[%s3133_s7 + $0x28] sm:$0xff] }
 0xbf0   : > { %2420 = vmatprep.subr.bf16.mxu0 %v2601_v12 }
 0xbf2   : > { %2333 = vmatmul.mubr.msk.f32.vlgmr.msra.gmra.mrb[14].mxu0 %vm510_vm2, %v1477_v53  ;;  %v2427_v53 = vpack.c.bf16 %v2145_v52, %v2144_v36 }
 0xbf3   : > { %2344 = vmatprep.mubr.msk.f32.mxu0 %vm2602_vm1, %v2603_v15  ;;  %2422 = vmatpush3.bf16.msra.mxu0 %v2421_v27 }
 0xbf4   : > { %2426 = vmatprep.subr.bf16.mxu0 %v2601_v12 }
 0xcc1   : > { %v1383_v54 = vpop.f32.mrb[12].mxu0 }
 0xcc2   : > { %v1387_v55 = vmul.f32 0.25, %v1383_v54  ;;  %v2324_v56 = vpop.f32.mrb[13].mxu0  ;;  %v2147_v54 = vld [vmem:[%s3133_s7 + $0x38] sm:$0xff] }
 0xcc4   : > { %v1388_v57 = vadd.f32 %v1387_v55, %v2810_v43 }
 0xcc5   : > { %v1550_v58 = vpop.f32.mrb[14].mxu0 }
 0xcc6   : > { %v1554_v59 = vmul.f32 0.25, %v1550_v58  ;;  %v2334_v60 = vpop.f32.mrb[15].mxu0  ;;  %v1389_v61 = vsel %vm587_vm7, %v1388_v57, -inf }
 0xcc7   : > { %1390 = vmax.xlane.f32.xlu1 %v1389_v61 }
 0xcc8   : > { %v1555_v62 = vadd.f32 %v1554_v59, %v2810_v43  ;;  %v1811_v59 = vrot.slane %v3008_v33, %v1009_v46  ;;  %v2153_v46 = vld [vmem:[%s3135_s9 + $0x50] sm:$0xff] }
 0xcca   : > { %v1556_v63 = vsel %vm587_vm7, %v1555_v62, -inf }
 0xccb   : > { %1557 = vmax.xlane.f32.xlu0 %v1556_v63 }
 0xd54   : > { %v1391_v0 = vpop.xlane.xlu1 %1390 }
 0xd55   : > { %v1392_v1 = vsub.f32 %v1388_v57, %v1391_v0 }
 0xd57   : > { %v1393_v2 = vmul.f32 1.442695, %v1392_v1  ;;  %v2151_v1 = vld [vmem:[%s3135_s9 + $0x40] sm:$0xff] }
 0xd58   : > { %v1558_v3 = vpop.xlane.xlu0 %1557 }
 0xd59   : > { %2510 = vpow2.f32 %v1393_v2  ;;  %v1559_v4 = vsub.f32 %v1555_v62, %v1558_v3  ;;  %v1816_v62 = vrot.slane %v3008_v33, %v1014_v47  ;;  %v2152_v2 = vld [vmem:[%s3135_s9 + $0x48] sm:$0xff]  ;;  %v2154_v47 = vld [vmem:[%s3135_s9 + $0x58] sm:$0xff] }
 0xd5a   : > { %v2433_v3 = vpack.c.bf16 %v2152_v2, %v2151_v1 }
 0xd5b   : > { %v1560_v5 = vmul.f32 1.442695, %v1559_v4  ;;  %v2436_v4 = vpack.c.bf16 %v2154_v47, %v2153_v46 }
 0xd5d   : > { %2512 = vpow2.f32 %v1560_v5  ;;  %v2155_v5 = vld [vmem:[%s3135_s9 + $0x60] sm:$0xff] }
 0xd63   : > { %v2511_v6 = vpop.eup %2510 }
 0xd64   : > { %v1395_v7 = vsel %vm587_vm7, %v2511_v6, 0.0 }
 0xd65   : > { %1396 = vadd.xlane.f32.xlu0 %v1395_v7 }
 0xd67   : > { %v2513_v8 = vpop.eup %2512 }
 0xd68   : > { %v1562_v9 = vsel %vm587_vm7, %v2513_v8, 0.0 }
 0xd69   : > { %1563 = vadd.xlane.f32.xlu1 %v1562_v9  ;;  %v2158_v9 = vld [vmem:[%s3135_s9 + $0x78] sm:$0xff] }
 0xd7a   : > { %1567 = vrot.lane.b32.xlu1 %v1307_v50, %s3144_s20 }
 0xd7b   : > { %1400 = vrot.lane.b32.xlu0 %v1307_v50, %s3145_s21  ;;  %s3084_s21 = scalar_lea.hbm %s3137_s11, %s2162_s19 }
 0xdf2   : > { %v1397_v43 = vpop.xlane.xlu0 %1396 }
 0xdf3   : > { %2514 = vrcp.f32 %v1397_v43 }
 0xdf6   : > { %v1564_v10 = vpop.xlane.xlu1 %1563  ;;  %v1401_v13 = vpop.permute.xlu0 %1400 }
 0xdf7   : > { %2516 = vrcp.f32 %v1564_v10  ;;  %2326 = vmatpush3.msra.mxu1 %v1401_v13  ;;  %v2149_v10 = vld [vmem:[%s3134_s8 + $0x1] ss:$0 sm:$0xff] }
 0xdf8   : > { %2335 = vmatprep.subr.mxu1 %v2603_v15 }
 0xdfa   : > { %v1568_v19 = vpop.permute.xlu1 %1567 }
 0xdfd   : > { %v2515_v14 = vpop.eup %2514 }
 0xdfe   : > { %v1399_v16 = vmul.f32 %v2515_v14, %v2511_v6  ;;  %v2156_v6 = vld [vmem:[%s3135_s9 + $0x68] sm:$0xff] }
 0xdff   : > { %v2439_v7 = vpack.c.bf16 %v2156_v6, %v2155_v5 }
 0xe00   : > { %2328 = vmatmul.mubr.msk.f32.vlgmr.msra.gmra.mrb[8].mxu1 %vm587_vm7, %v1399_v16 }
 0xe01   : > { %v2517_v21 = vpop.eup %2516  ;;  %2336 = vmatpush3.msra.mxu1 %v1568_v19  ;;  %2337 = vmatprep.mubr.msk.f32.mxu1 %vm2602_vm1, %v2603_v15 }
 0xe02   : > { %v1566_v23 = vmul.f32 %v2517_v21, %v2513_v8  ;;  %2423 = vmatprep.subr.bf16.mxu1 %v2601_v12  ;;  %v2157_v8 = vld [vmem:[%s3135_s9 + $0x70] sm:$0xff] }
 0xe03   : > { %v2442_v43 = vpack.c.bf16 %v2158_v9, %v2157_v8 }
 0xe04   : > { %2338 = vmatmul.mubr.msk.f32.vlgmr.msra.gmra.mrb[10].mxu1 %vm587_vm7, %v1566_v23 }
 0xe05   : > { %2425 = vmatpush3.bf16.msra.mxu1 %v2424_v22  ;;  %2351 = vmatprep.mubr.msk.f32.mxu1 %vm2602_vm1, %v2603_v15  ;;  %v1921_v22 = vrot.slane %v3008_v33, %v1117_v11 }
 0xe06   : > { %2432 = vmatprep.subr.bf16.mxu1 %v2601_v12 }
 0xed3   : > { %v1472_v28 = vpop.f32.mrb[8].mxu1 }
 0xed4   : > { %v2329_v29 = vpop.f32.mrb[9].mxu1  ;;  %2352 = vmatmul.mubr.msk.f32.vlgmr.msra.gmra.mrb[12].mxu1 %vm510_vm2, %v1472_v28 }
 0xed5   : > { %2381 = vmatprep.mubr.msk.f32.mxu1 %vm2602_vm1, %v2603_v15  ;;  %2434 = vmatpush3.bf16.msra.mxu1 %v2433_v3 }
 0xed6   : > { %2435 = vmatprep.subr.bf16.mxu1 %v2601_v12 }
 0xed7   : > { %v1639_v30 = vpop.f32.mrb[10].mxu1 }
 0xed8   : > { %v2339_v31 = vpop.f32.mrb[11].mxu1  ;;  %2345 = vmatmul.mubr.msk.f32.vlgmr.msra.gmra.mrb[16].mxu0 %vm510_vm2, %v1639_v30 }
 0xed9   : > { %2362 = vmatprep.mubr.msk.f32.mxu0 %vm2602_vm1, %v2603_v15  ;;  %2428 = vmatpush3.bf16.msra.mxu0 %v2427_v53 }
 0xeda   : > { %2429 = vmatprep.subr.bf16.mxu0 %v2601_v12  ;;  %2437 = vmatpush3.bf16.msra.mxu1 %v2436_v4 }
 0xedb   : > { %2438 = vmatprep.subr.bf16.mxu1 %v2601_v12 }
 0xede   : > { %2440 = vmatpush3.bf16.msra.mxu1 %v2439_v7 }
 0xedf   : > { %2441 = vmatprep.subr.bf16.mxu1 %v2601_v12 }
 0xee2   : > { %2443 = vmatpush3.bf16.msra.mxu1 %v2442_v43 }
 0xfa7   : > { %v1785_v32 = vpop.f32.mrb[12].mxu1 }
 0xfa8   : > { %v2353_v34 = vpop.f32.mrb[13].mxu1 }
 0xfab   : > { %v1712_v25 = vpop.f32.mrb[16].mxu0 }
 0xfac   : > { %v1786_v40 = vadd.f32 %v1785_v32, %v1712_v25  ;;  %v2346_v41 = vpop.f32.mrb[17].mxu0 }
 0xfae   : > { %v1793_v42 = vadd.f32 %v1792_v37, %v1786_v40  ;;  %v2012_v40 = vrot.slane %v3008_v33, %v1209_v38 }
 0xfb0   : > { %v1794_v44 = vadd.f32 %v1793_v42, %v2947_v45  ;;  %v2146_v45 = vld [vmem:[%s3133_s7 + $0x30] sm:$0xff]  ;;  %v2017_v42 = vrot.slane %v3008_v33, %v1214_v39 }
 0xfb1   : > { %v2430_v55 = vpack.c.bf16 %v2147_v54, %v2146_v45 }
 0xfb2   : > { %v1795_v48 = vsel %vm378_vm0, %v1794_v44, 0.0 }
 0xfb3   : > { %1796 = vadd.xlane.f32.xlu1 %v1795_v48  ;;  %2431 = vmatpush3.bf16.msra.mxu0 %v2430_v55 }
0x1040   : > { %v1797_v15 = vpop.xlane.xlu1 %1796 }
0x1041   : > { %v1798_v49 = vmul.f32 0.03125, %v1797_v15 }
0x1043   : > { %v1799_v50 = vsub.f32 %v1794_v44, %v1798_v49 }
0x1045   : > { %v1800_v51 = vmul.f32 %v1799_v50, %v1799_v50 }
0x1047   : > { %v1801_v20 = vsel %vm378_vm0, %v1800_v51, 0.0 }
0x1048   : > { %1802 = vadd.xlane.f32.xlu0 %v1801_v20 }
0x10d5   : > { %v1803_v56 = vpop.xlane.xlu0 %1802 }
0x10d6   : > { %v1804_v57 = vmul.f32 0.03125, %v1803_v56 }
0x10d8   : > { %v1805_v58 = vadd.f32 1e-12, %v1804_v57 }
0x10da   : > { %2518 = vrsqrt.f32 %v1805_v58 }
0x10e4   : > { %v2519_v60 = vpop.eup %2518 }
0x10e5   : > { %v1807_v61 = vmul.f32 %v2519_v60, %v1799_v50 }
0x10e7   : > { %v1812_v63 = vmul.f32 %v1811_v59, %v1807_v61 }
0x10e9   : > { %v1817_v0 = vadd.f32 %v1816_v62, %v1812_v63 }
0x10eb   : > { %2363 = vmatmul.mubr.msk.f32.vlgmr.msra.gmra.mrb[18].mxu0 %vm378_vm0, %v1817_v0 }
0x11be   : > { %v1900_v13 = vpop.f32.mrb[18].mxu0 }
0x11bf   : > { %v1901_v14 = vadd.f32 %v2149_v10, %v1900_v13  ;;  %v2364_v16 = vpop.f32.mrb[19].mxu0 }
0x11c1   : > { %v1905_v17 = vmul.f32 0.70710677, %v1901_v14  ;;  %v1904_v18 = vmul.f32 0.5, %v1901_v14 }
0x11c3   : > { %2520 = verf.f32 %v1905_v17 }
0x11cd   : > { %v2521_v12 = vpop.eup %2520 }
0x11ce   : > { %v1907_v19 = vadd.f32 1.0, %v2521_v12 }
0x11d0   : > { %v1908_v21 = vmul.f32 %v1907_v19, %v1904_v18 }
0x11d2   : > { %2382 = vmatmul.mubr.msk.f32.vlgmr.msra.gmra.mrb[14].mxu1 %vm1119_vm8, %v1908_v21 }
0x12a5   : > { %v1991_v23 = vpop.f32.mrb[14].mxu1 }
0x12a6   : > { %v1992_v24 = vadd.f32 %v1991_v23, %v1921_v22  ;;  %v2383_v26 = vpop.f32.mrb[15].mxu1 }
0x12a8   : > { %v1995_v27 = vadd.f32 %v1992_v24, %v1817_v0 }
0x12aa   : > { %v1996_v28 = vsel %vm378_vm0, %v1995_v27, 0.0 }
0x12ab   : > { %1997 = vadd.xlane.f32.xlu0 %v1996_v28 }
0x1338   : > { %v1998_v29 = vpop.xlane.xlu0 %1997 }
0x1339   : > { %v1999_v30 = vmul.f32 0.03125, %v1998_v29 }
0x133b   : > { %v2000_v31 = vsub.f32 %v1995_v27, %v1999_v30 }
0x133d   : > { %v2001_v32 = vmul.f32 %v2000_v31, %v2000_v31 }
0x133f   : > { %v2002_v34 = vsel %vm378_vm0, %v2001_v32, 0.0 }
0x1340   : > { %2003 = vadd.xlane.f32.xlu1 %v2002_v34 }
0x13cd   : > { %v2004_v37 = vpop.xlane.xlu1 %2003 }
0x13ce   : > { %v2005_v25 = vmul.f32 0.03125, %v2004_v37 }
0x13d0   : > { %v2006_v11 = vadd.f32 1e-12, %v2005_v25 }
0x13d2   : > { %2522 = vrsqrt.f32 %v2006_v11 }
0x13dc   : > { %v2523_v41 = vpop.eup %2522 }
0x13dd   : > { %v2008_v44 = vmul.f32 %v2523_v41, %v2000_v31 }
0x13df   : > { %v2013_v48 = vmul.f32 %v2012_v40, %v2008_v44 }
0x13e1   : > { %v2018_v15 = vadd.f32 %v2017_v42, %v2013_v48 }
0x13e3   : > { %2019 = vst.msk [vmem:[#allocation2] sm:$0xff] %vm378_vm0, %v2018_v15 }
0x13ea   : > { %v2167_v35 = vld [vmem:[%s2165_s22 - $0x1] sm:$0x1] }
0x13eb   : > { %2025 = vst.msk [vmem:[%s365_s26] sm:$0x1] %vm2024_vm9, %v2167_v35 }
0x13ec   : > { %2547 = shalt.err (!%p2544_p6)
}
0x13ed   : > { %s2548_s15 = scalar_lea.hbm %s3084_s21, 16  ;;  %s2552_s26 = scalar_lea.hbm %s3137_s11, 32 }
0x13ee   : > { %p2549_p7 = scmp.ne.s32.totalorder %s3084_s21, %s2548_s15  ;;  %p2553_p12 = scmp.lt.u32.totalorder %s3084_s21, %s3137_s11 }
0x13ef   : > { %p2554_p13 = scmp.lt.u32.totalorder %s2552_s26, %s2548_s15  ;;  %p2556_p1 = scmp.lt.u32.totalorder %s2548_s15, %s3084_s21 }
0x13f0   : > { %p2550_p10 = pnand %p2549_p7, %p2722_p8 }
0x13f1   : > { %p2555_p0 = por %p2554_p13, %p2553_p12 }
0x13f2   : > { %p2551_p11 = pneg %p2550_p10 }
0x13f3   : > { %p2557_p2 = por %p2556_p1, %p2555_p0 }
0x13f5   : > { %p2558_p3 = pnand %p2557_p2, %p2551_p11 }
0x13f7   : > { %2561 = shalt.err (!%p2558_p3)
}
0x13f8   : > { %2444 = dma.vmem_to_hbm [thread:$0]  (%p2722_p8), %s3086_s24, 16, %s3084_s21, %s2027_s12  }
0x13f9 PF: > { %p2450_p4 = scmp.ge.s32.totalorder %s2598_s30, 2  ;;  %s2051_s22 = sand.u32 1, %s2586_s27  }
0x13fa   : > { %s2052_s14 = scalar_lea.sflag [#allocation6], %s2051_s22 }
0x13fb   : > { %p2447_p5 = pnand %p2450_p4, %p2726_p9 }
0x13fd   : > { %2581 = dma.done.wait (!%p2447_p5), %s2052_s14, 16  }
0x13fe   : > { %2583 = vsyncadd (!%p2447_p5), %s2052_s14, 4294967280  ;;  %p25_p6 = scmp.ge.s32.totalorder %s2709_s13, 4   ;;  %s3146_s27 = smov %s2590_s28 }
0x13ff   : > { %s3147_s28 = smov %s2594_s29  ;;  %s3148_s29 = smov %s2720_s16 }
0x1400   : > { %s3149_s30 = smov %s2709_s13  ;;  %27 = sbr.rel (!%p25_p6) target bundleno = 15 (0xf), region = 106 }
0x1407   :  { %2056 = vsyncpa [#allocation6], 1 }
0x1408   :  { %2058 = vsyncpa [#allocation6 + $0x1], 1 }

</bundles_post_ra>
